<compile_context>
chip_gen: v7x
topology: tpu7x:2x2x1
jax: 0.10.0
libtpu: 0.0.40
codegen_flags: <defaults>
</compile_context>

<pallas_src>
import jax
import jax.numpy as jnp
from jax import lax
from jax.experimental import pallas as pl
from jax.experimental.pallas import tpu as pltpu

DIM = 64
HEADS = 8
DIM_HEAD = 64
INNER = HEADS * DIM_HEAD      # 512
MLP_DIM = 128
DEPTH = 8
EPS = 1e-5                    # nn.LayerNorm default
SCALE = DIM_HEAD ** -0.5

VMEM_LIMIT = 32 * 1024 * 1024  # safe on v5e/v6e/v7x; kernel needs only a few MiB


# ---------------------------------------------------------------------------
# In-kernel math helpers
# ---------------------------------------------------------------------------
def _layernorm(x, gamma, beta):
    mean = jnp.mean(x, axis=-1, keepdims=True)
    xc = x - mean
    var = jnp.mean(xc * xc, axis=-1, keepdims=True)
    return xc * lax.rsqrt(var + EPS) * gamma + beta


def _erf(x):
    # Abramowitz & Stegun 7.1.26, |error| <= 1.5e-7.
    a1, a2, a3, a4, a5 = (0.254829592, -0.284496736, 1.421413741,
                          -1.453152027, 1.061405429)
    p = 0.3275911
    sgn = jnp.where(x < 0.0, -1.0, 1.0)
    ax = jnp.abs(x)
    t = 1.0 / (1.0 + p * ax)
    poly = ((((a5 * t + a4) * t + a3) * t + a2) * t + a1) * t
    return sgn * (1.0 - poly * jnp.exp(-ax * ax))


def _gelu_exact(x):
    # Matches torch.nn.GELU() (erf formulation).
    return 0.5 * x * (1.0 + _erf(x * 0.7071067811865476))


# ---------------------------------------------------------------------------
# Whole-stack fused kernel:
#   grid = (batch_tiles, DEPTH);  one grid step = one layer for one batch tile.
#   Residual stream lives in the (resident) output block across the depth axis.
# ---------------------------------------------------------------------------
def _stack_kernel(x_ref,
                  ln1g_ref, ln1b_ref, wqkv_ref, wo_ref, bo_ref,
                  ln2g_ref, ln2b_ref, w1_ref, b1_ref, w2_ref, b2_ref,
                  o_ref, ctx_ref):
    Bt, S, D = x_ref.shape
    N = Bt * S
    d = pl.program_id(1)

    # Layer 0: pull the residual stream into the resident output block (VMEM).
    @pl.when(d == 0)
    def _():
        o_ref[...] = x_ref[...]

    x = o_ref[...].reshape(N, D).astype(jnp.float32)

    # ---------------- PreNorm(Attention) + residual ----------------
    ln = _layernorm(x, ln1g_ref[...], ln1b_ref[...])

    # Single lane-dense QKV matmul: (N, 64) @ (64, 1536).
    qkv = jnp.dot(ln, wqkv_ref[...], preferred_element_type=jnp.float32)
    q_all = qkv[:, 0 * INNER:1 * INNER]
    k_all = qkv[:, 1 * INNER:2 * INNER]
    v_all = qkv[:, 2 * INNER:3 * INNER]

    # Per-(batch, head) softmax + AV; context assembled into a VMEM scratch so
    # the output projection is a single K=512 matmul.
    for b in range(Bt):
        r0, r1 = b * S, (b + 1) * S
        for h in range(HEADS):
            c0, c1 = h * DIM_HEAD, (h + 1) * DIM_HEAD
            qh = q_all[r0:r1, c0:c1]
            kh = k_all[r0:r1, c0:c1]
            vh = v_all[r0:r1, c0:c1]
            dots = jnp.einsum("sf,tf->st", qh, kh,
                              preferred_element_type=jnp.float32) * SCALE
            dots = dots - jnp.max(dots, axis=-1, keepdims=True)
            e = jnp.exp(dots)
            attn = e * pl.reciprocal(jnp.sum(e, axis=-1, keepdims=True),
                                     approx=True)
            ctx_ref[r0:r1, c0:c1] = jnp.dot(attn, vh,
                                            preferred_element_type=jnp.float32)

    # Single output projection across all heads: (N, 512) @ (512, 64).
    attn_out = jnp.dot(ctx_ref[...], wo_ref[...],
                       preferred_element_type=jnp.float32) + bo_ref[...]
    x = attn_out + x

    # ---------------- PreNorm(FeedForward) + residual ----------------
    ln2 = _layernorm(x, ln2g_ref[...], ln2b_ref[...])
    h = jnp.dot(ln2, w1_ref[...], preferred_element_type=jnp.float32) + b1_ref[...]
    h = _gelu_exact(h)
    y = jnp.dot(h, w2_ref[...], preferred_element_type=jnp.float32) + b2_ref[...]
    x = y + x

    o_ref[...] = x.reshape(Bt, S, D).astype(o_ref.dtype)


def _batch_tile(B, S):
    # Rows per parallel step: aim for >= 256 rows, but keep >= 2 parallel grid
    # steps when B >= 2 so both v7x TensorCores get work.  Must divide B.
    cap = max(1, -(-256 // S))          # ceil(256 / S)
    if B >= 2:
        cap = max(1, min(cap, B // 2))
    bt = 1
    for t in range(1, cap + 1):
        if B % t == 0:
            bt = t
    return bt


def transformer_forward(x, p):
    B, S, D = x.shape
    Bt = _batch_tile(B, S)
    n_bt = B // Bt
    N = Bt * S

    layer_spec = lambda shape: pl.BlockSpec((None,) + shape,
                                            lambda bt, d: (d,) + (0,) * len(shape))
    act_spec = pl.BlockSpec((Bt, S, D), lambda bt, d: (bt, 0, 0))

    return pl.pallas_call(
        _stack_kernel,
        out_shape=jax.ShapeDtypeStruct((B, S, D), x.dtype),
        grid=(n_bt, DEPTH),
        in_specs=[
            act_spec,                                 # x (read at layer 0 only)
            layer_spec((1, DIM)),                     # ln1_g
            layer_spec((1, DIM)),                     # ln1_b
            layer_spec((DIM, 3 * INNER)),             # wqkv
            layer_spec((INNER, DIM)),                 # wo
            layer_spec((1, DIM)),                     # bo
            layer_spec((1, DIM)),                     # ln2_g
            layer_spec((1, DIM)),                     # ln2_b
            layer_spec((DIM, MLP_DIM)),               # w1
            layer_spec((1, MLP_DIM)),                 # b1
            layer_spec((MLP_DIM, DIM)),               # w2
            layer_spec((1, DIM)),                     # b2
        ],
        out_specs=act_spec,                           # resident across depth axis
        scratch_shapes=[pltpu.VMEM((N, INNER), jnp.float32)],
        compiler_params=pltpu.CompilerParams(
            dimension_semantics=("parallel", "arbitrary"),
            vmem_limit_bytes=VMEM_LIMIT,
        ),
    )(x, p["ln1_g"], p["ln1_b"], p["wqkv"], p["wo"], p["bo"],
      p["ln2_g"], p["ln2_b"], p["w1"], p["b1"], p["w2"], p["b2"])


# ---------------------------------------------------------------------------
# Parameter construction (torch layout) + kernel layout conversion
# ---------------------------------------------------------------------------
def init_layer_raw(key):
    ks = jax.random.split(key, 7)
    s = 0.02
    return dict(
        ln1_g=jnp.ones((DIM,), jnp.float32),
        ln1_b=jnp.zeros((DIM,), jnp.float32),
        w_qkv=jax.random.normal(ks[0], (3 * INNER, DIM), jnp.float32) * s,  # torch (out,in)
        w_out=jax.random.normal(ks[1], (DIM, INNER), jnp.float32) * s,
        b_out=jax.random.normal(ks[2], (DIM,), jnp.float32) * s,
        ln2_g=jnp.ones((DIM,), jnp.float32),
        ln2_b=jnp.zeros((DIM,), jnp.float32),
        w1=jax.random.normal(ks[3], (MLP_DIM, DIM), jnp.float32) * s,
        b1=jax.random.normal(ks[4], (MLP_DIM,), jnp.float32) * s,
        w2=jax.random.normal(ks[5], (DIM, MLP_DIM), jnp.float32) * s,
        b2=jax.random.normal(ks[6], (DIM,), jnp.float32) * s,
    )


def to_stacked_params(raw_layers):
    # One-time wrapper-side relayout: transpose torch (out,in) weights, stack
    # all layers along a leading layer axis.  Nothing is re-cast in the kernel.
    return dict(
        ln1_g=jnp.stack([r["ln1_g"].reshape(1, DIM) for r in raw_layers]),
        ln1_b=jnp.stack([r["ln1_b"].reshape(1, DIM) for r in raw_layers]),
        wqkv=jnp.stack([r["w_qkv"].T for r in raw_layers]),            # (L, D, 3*INNER)
        wo=jnp.stack([r["w_out"].T for r in raw_layers]),              # (L, INNER, D)
        bo=jnp.stack([r["b_out"].reshape(1, DIM) for r in raw_layers]),
        ln2_g=jnp.stack([r["ln2_g"].reshape(1, DIM) for r in raw_layers]),
        ln2_b=jnp.stack([r["ln2_b"].reshape(1, DIM) for r in raw_layers]),
        w1=jnp.stack([r["w1"].T for r in raw_layers]),                 # (L, D, MLP)
        b1=jnp.stack([r["b1"].reshape(1, MLP_DIM) for r in raw_layers]),
        w2=jnp.stack([r["w2"].T for r in raw_layers]),                 # (L, MLP, D)
        b2=jnp.stack([r["b2"].reshape(1, DIM) for r in raw_layers]),
    )


# ---------------------------------------------------------------------------
# Pure-JAX reference (mirrors the PyTorch forward exactly)
# ---------------------------------------------------------------------------
def _ln_ref(x, g, b):
    m = jnp.mean(x, axis=-1, keepdims=True)
    v = jnp.mean((x - m) ** 2, axis=-1, keepdims=True)
    return (x - m) / jnp.sqrt(v + EPS) * g + b


def ref_forward(x, raw_layers):
    B, S, _ = x.shape
    for r in raw_layers:
        # PreNorm(Attention) + residual
        ln = _ln_ref(x, r["ln1_g"], r["ln1_b"])
        qkv = jnp.einsum("bnd,od->bno", ln, r["w_qkv"])
        q, k, v = jnp.split(qkv, 3, axis=-1)
        split = lambda t: t.reshape(B, S, HEADS, DIM_HEAD).transpose(0, 2, 1, 3)
        q, k, v = split(q), split(k), split(v)
        dots = jnp.einsum("bhnf,bhmf->bhnm", q, k) * SCALE
        attn = jax.nn.softmax(dots, axis=-1)
        ctx = jnp.einsum("bhnm,bhmf->bhnf", attn, v)
        ctx = ctx.transpose(0, 2, 1, 3).reshape(B, S, INNER)
        out = jnp.einsum("bno,do->bnd", ctx, r["w_out"]) + r["b_out"]
        x = out + x
        # PreNorm(FeedForward) + residual
        ln = _ln_ref(x, r["ln2_g"], r["ln2_b"])
        h = jnp.einsum("bnd,md->bnm", ln, r["w1"]) + r["b1"]
        h = jax.nn.gelu(h, approximate=False)          # exact erf GELU (torch default)
        y = jnp.einsum("bnm,dm->bnd", h, r["w2"]) + r["b2"]
        x = y + x
    return x


# ---------------------------------------------------------------------------
if __name__ == "__main__":
    key = jax.random.PRNGKey(0)
    k_x, k_p = jax.random.split(key)

    B, S = 2, 8
    x = jax.random.normal(k_x, (B, S, DIM), dtype=jnp.float32)

    raw_layers = []
    lk = k_p
    for _ in range(DEPTH):
        lk, sub = jax.random.split(lk)
        raw_layers.append(init_layer_raw(sub))
    stacked = to_stacked_params(raw_layers)

    fwd = jax.jit(transformer_forward)
    y = fwd(x, stacked)
    jax.block_until_ready(y)

    y_ref = ref_forward(x, raw_layers)
    err = float(jnp.max(jnp.abs(y - y_ref)))
    assert y.shape == x.shape
    assert jnp.allclose(y, y_ref, atol=1e-3, rtol=1e-3), f"max abs err {err}"

    print("KERNEL_OK")
</pallas_src>

<mosaic_0001>
module attributes {stable_mosaic.version = 11 : i64} {
  func.func @_stack_kernel(%arg0: i32, %arg1: i32, %arg2: memref<1x8x64xf32, #tpu.memory_space<vmem>>, %arg3: memref<1x1x64xf32, #tpu.memory_space<vmem>>, %arg4: memref<1x1x64xf32, #tpu.memory_space<vmem>>, %arg5: memref<1x64x1536xf32, #tpu.memory_space<vmem>>, %arg6: memref<1x512x64xf32, #tpu.memory_space<vmem>>, %arg7: memref<1x1x64xf32, #tpu.memory_space<vmem>>, %arg8: memref<1x1x64xf32, #tpu.memory_space<vmem>>, %arg9: memref<1x1x64xf32, #tpu.memory_space<vmem>>, %arg10: memref<1x64x128xf32, #tpu.memory_space<vmem>>, %arg11: memref<1x1x128xf32, #tpu.memory_space<vmem>>, %arg12: memref<1x128x64xf32, #tpu.memory_space<vmem>>, %arg13: memref<1x1x64xf32, #tpu.memory_space<vmem>>, %arg14: memref<1x8x64xf32, #tpu.memory_space<vmem>>, %arg15: memref<8x512xf32, #tpu.memory_space<vmem>>) attributes {dimension_semantics = [#tpu.dimension_semantics<parallel>, #tpu.dimension_semantics<arbitrary>], iteration_bounds = array<i64: 2, 8>, scalar_prefetch = 0 : i64, scratch_operands = 1 : i64, tpu.core_type = #tpu.core_type<tc>, window_params = [{transform_indices = @transform_0, window_bounds = array<i64: 1, 8, 64>}, {transform_indices = @transform_1, window_bounds = array<i64: 1, 1, 64>}, {transform_indices = @transform_2, window_bounds = array<i64: 1, 1, 64>}, {transform_indices = @transform_3, window_bounds = array<i64: 1, 64, 1536>}, {transform_indices = @transform_4, window_bounds = array<i64: 1, 512, 64>}, {transform_indices = @transform_5, window_bounds = array<i64: 1, 1, 64>}, {transform_indices = @transform_6, window_bounds = array<i64: 1, 1, 64>}, {transform_indices = @transform_7, window_bounds = array<i64: 1, 1, 64>}, {transform_indices = @transform_8, window_bounds = array<i64: 1, 64, 128>}, {transform_indices = @transform_9, window_bounds = array<i64: 1, 1, 128>}, {transform_indices = @transform_10, window_bounds = array<i64: 1, 128, 64>}, {transform_indices = @transform_11, window_bounds = array<i64: 1, 1, 64>}, {transform_indices = @transform_12, window_bounds = array<i64: 1, 8, 64>}]} {
    %c0_i32 = arith.constant 0 : i32
    %0 = arith.cmpi eq, %arg1, %c0_i32 : i32
    %1 = arith.extui %0 : i1 to i32
    %c0_i32_0 = arith.constant 0 : i32
    %2 = arith.cmpi ne, %1, %c0_i32_0 : i32
    scf.if %2 {
      %c0_119 = arith.constant 0 : index
      %c0_120 = arith.constant 0 : index
      %c0_121 = arith.constant 0 : index
      %270 = vector.load %arg2[%c0_119, %c0_120, %c0_121] : memref<1x8x64xf32, #tpu.memory_space<vmem>>, vector<1x8x64xf32>
      %c0_122 = arith.constant 0 : index
      %c0_123 = arith.constant 0 : index
      %c0_124 = arith.constant 0 : index
      %271 = vector.load %arg14[%c0_122, %c0_123, %c0_124] : memref<1x8x64xf32, #tpu.memory_space<vmem>>, vector<1x8x64xf32>
      tpu.vector_store %arg14[%c0_122, %c0_123, %c0_124], %270 {strides = array<i32>} : memref<1x8x64xf32, #tpu.memory_space<vmem>>, vector<1x8x64xf32>,
    } else {
    }
    %c0 = arith.constant 0 : index
    %c0_1 = arith.constant 0 : index
    %c0_2 = arith.constant 0 : index
    %3 = vector.load %arg14[%c0, %c0_1, %c0_2] : memref<1x8x64xf32, #tpu.memory_space<vmem>>, vector<1x8x64xf32>
    %4 = vector.shape_cast %3 : vector<1x8x64xf32> to vector<8x64xf32>
    %c0_3 = arith.constant 0 : index
    %c0_4 = arith.constant 0 : index
    %c0_5 = arith.constant 0 : index
    %5 = vector.load %arg3[%c0_3, %c0_4, %c0_5] : memref<1x1x64xf32, #tpu.memory_space<vmem>>, vector<1x1x64xf32>
    %6 = vector.shape_cast %5 : vector<1x1x64xf32> to vector<1x64xf32>
    %c0_6 = arith.constant 0 : index
    %c0_7 = arith.constant 0 : index
    %c0_8 = arith.constant 0 : index
    %7 = vector.load %arg4[%c0_6, %c0_7, %c0_8] : memref<1x1x64xf32, #tpu.memory_space<vmem>>, vector<1x1x64xf32>
    %8 = vector.shape_cast %7 : vector<1x1x64xf32> to vector<1x64xf32>
    %cst = arith.constant dense<0.000000e+00> : vector<8xf32>
    %9 = vector.multi_reduction <add>, %4, %cst [1] : vector<8x64xf32> to vector<8xf32>
    %10 = vector.shape_cast %9 : vector<8xf32> to vector<8x1xf32>
    %cst_9 = arith.constant 6.400000e+01 : f32
    %11 = vector.broadcast %cst_9 : f32 to vector<8x1xf32>
    %12 = arith.divf %10, %11 : vector<8x1xf32>
    %13 = vector.broadcast %12 : vector<8x1xf32> to vector<8x64xf32>
    %14 = arith.subf %4, %13 : vector<8x64xf32>
    %15 = arith.mulf %14, %14 : vector<8x64xf32>
    %cst_10 = arith.constant dense<0.000000e+00> : vector<8xf32>
    %16 = vector.multi_reduction <add>, %15, %cst_10 [1] : vector<8x64xf32> to vector<8xf32>
    %17 = vector.shape_cast %16 : vector<8xf32> to vector<8x1xf32>
    %cst_11 = arith.constant 6.400000e+01 : f32
    %18 = vector.broadcast %cst_11 : f32 to vector<8x1xf32>
    %19 = arith.divf %17, %18 : vector<8x1xf32>
    %cst_12 = arith.constant 9.99999974E-6 : f32
    %20 = vector.broadcast %cst_12 : f32 to vector<8x1xf32>
    %21 = arith.addf %19, %20 : vector<8x1xf32>
    %22 = math.rsqrt %21 : vector<8x1xf32>
    %23 = vector.broadcast %22 : vector<8x1xf32> to vector<8x64xf32>
    %24 = arith.mulf %14, %23 : vector<8x64xf32>
    %25 = vector.broadcast %6 : vector<1x64xf32> to vector<8x64xf32>
    %26 = arith.mulf %24, %25 : vector<8x64xf32>
    %27 = vector.broadcast %8 : vector<1x64xf32> to vector<8x64xf32>
    %28 = arith.addf %26, %27 : vector<8x64xf32>
    %c0_13 = arith.constant 0 : index
    %c0_14 = arith.constant 0 : index
    %c0_15 = arith.constant 0 : index
    %29 = vector.load %arg5[%c0_13, %c0_14, %c0_15] : memref<1x64x1536xf32, #tpu.memory_space<vmem>>, vector<1x64x1536xf32>
    %30 = vector.shape_cast %29 : vector<1x64x1536xf32> to vector<64x1536xf32>
    %cst_16 = arith.constant dense<0.000000e+00> : vector<8x1536xf32>
    %31 = tpu.matmul %28, %30, %cst_16 {dimension_numbers = #tpu.dot_dimension_numbers<[1], [0], [0], [1], [0, 0, 1, 1], [], []>} : vector<8x64xf32>, vector<64x1536xf32>, vector<8x1536xf32> -> vector<8x1536xf32>
    %32 = vector.extract_strided_slice %31 {offsets = [0, 0], sizes = [8, 512], strides = [1, 1]} : vector<8x1536xf32> to vector<8x512xf32>
    %33 = vector.extract_strided_slice %31 {offsets = [0, 512], sizes = [8, 512], strides = [1, 1]} : vector<8x1536xf32> to vector<8x512xf32>
    %34 = vector.extract_strided_slice %31 {offsets = [0, 1024], sizes = [8, 512], strides = [1, 1]} : vector<8x1536xf32> to vector<8x512xf32>
    %35 = vector.extract_strided_slice %32 {offsets = [0, 0], sizes = [8, 64], strides = [1, 1]} : vector<8x512xf32> to vector<8x64xf32>
    %36 = vector.extract_strided_slice %33 {offsets = [0, 0], sizes = [8, 64], strides = [1, 1]} : vector<8x512xf32> to vector<8x64xf32>
    %37 = vector.extract_strided_slice %34 {offsets = [0, 0], sizes = [8, 64], strides = [1, 1]} : vector<8x512xf32> to vector<8x64xf32>
    "tpu.trace_start"() <{level = 10 : i32, message = "sf,tf->st"}> : () -> ()
    %cst_17 = arith.constant dense<0.000000e+00> : vector<8x8xf32>
    %38 = tpu.matmul %35, %36, %cst_17 {dimension_numbers = #tpu.dot_dimension_numbers<[1], [1], [0], [0], [0, 0, 1, 0], [], []>} : vector<8x64xf32>, vector<8x64xf32>, vector<8x8xf32> -> vector<8x8xf32>
    "tpu.trace_stop"() : () -> ()
    %cst_18 = arith.constant 1.250000e-01 : f32
    %39 = vector.broadcast %cst_18 : f32 to vector<8x8xf32>
    %40 = arith.mulf %38, %39 : vector<8x8xf32>
    %cst_19 = arith.constant dense<0xFF800000> : vector<8xf32>
    %41 = vector.multi_reduction <maximumf>, %40, %cst_19 [1] : vector<8x8xf32> to vector<8xf32>
    %42 = vector.shape_cast %41 : vector<8xf32> to vector<8x1xf32>
    %43 = vector.broadcast %42 : vector<8x1xf32> to vector<8x8xf32>
    %44 = arith.subf %40, %43 : vector<8x8xf32>
    %45 = math.exp %44 : vector<8x8xf32>
    %cst_20 = arith.constant dense<0.000000e+00> : vector<8xf32>
    %46 = vector.multi_reduction <add>, %45, %cst_20 [1] : vector<8x8xf32> to vector<8xf32>
    %47 = vector.shape_cast %46 : vector<8xf32> to vector<8x1xf32>
    %48 = tpu.reciprocal %47 {approx = true} : vector<8x1xf32> -> vector<8x1xf32>
    %49 = vector.broadcast %48 : vector<8x1xf32> to vector<8x8xf32>
    %50 = arith.mulf %45, %49 : vector<8x8xf32>
    %cst_21 = arith.constant dense<0.000000e+00> : vector<8x64xf32>
    %51 = tpu.matmul %50, %37, %cst_21 {dimension_numbers = #tpu.dot_dimension_numbers<[1], [0], [0], [1], [0, 0, 1, 1], [], []>} : vector<8x8xf32>, vector<8x64xf32>, vector<8x64xf32> -> vector<8x64xf32>
    %c0_22 = arith.constant 0 : index
    %c0_23 = arith.constant 0 : index
    %52 = vector.load %arg15[%c0_22, %c0_23] : memref<8x512xf32, #tpu.memory_space<vmem>>, vector<8x64xf32>
    tpu.vector_store %arg15[%c0_22, %c0_23], %51 {strides = array<i32>} : memref<8x512xf32, #tpu.memory_space<vmem>>, vector<8x64xf32>,
    %53 = vector.extract_strided_slice %32 {offsets = [0, 64], sizes = [8, 64], strides = [1, 1]} : vector<8x512xf32> to vector<8x64xf32>
    %54 = vector.extract_strided_slice %33 {offsets = [0, 64], sizes = [8, 64], strides = [1, 1]} : vector<8x512xf32> to vector<8x64xf32>
    %55 = vector.extract_strided_slice %34 {offsets = [0, 64], sizes = [8, 64], strides = [1, 1]} : vector<8x512xf32> to vector<8x64xf32>
    "tpu.trace_start"() <{level = 10 : i32, message = "sf,tf->st"}> : () -> ()
    %cst_24 = arith.constant dense<0.000000e+00> : vector<8x8xf32>
    %56 = tpu.matmul %53, %54, %cst_24 {dimension_numbers = #tpu.dot_dimension_numbers<[1], [1], [0], [0], [0, 0, 1, 0], [], []>} : vector<8x64xf32>, vector<8x64xf32>, vector<8x8xf32> -> vector<8x8xf32>
    "tpu.trace_stop"() : () -> ()
    %cst_25 = arith.constant 1.250000e-01 : f32
    %57 = vector.broadcast %cst_25 : f32 to vector<8x8xf32>
    %58 = arith.mulf %56, %57 : vector<8x8xf32>
    %cst_26 = arith.constant dense<0xFF800000> : vector<8xf32>
    %59 = vector.multi_reduction <maximumf>, %58, %cst_26 [1] : vector<8x8xf32> to vector<8xf32>
    %60 = vector.shape_cast %59 : vector<8xf32> to vector<8x1xf32>
    %61 = vector.broadcast %60 : vector<8x1xf32> to vector<8x8xf32>
    %62 = arith.subf %58, %61 : vector<8x8xf32>
    %63 = math.exp %62 : vector<8x8xf32>
    %cst_27 = arith.constant dense<0.000000e+00> : vector<8xf32>
    %64 = vector.multi_reduction <add>, %63, %cst_27 [1] : vector<8x8xf32> to vector<8xf32>
    %65 = vector.shape_cast %64 : vector<8xf32> to vector<8x1xf32>
    %66 = tpu.reciprocal %65 {approx = true} : vector<8x1xf32> -> vector<8x1xf32>
    %67 = vector.broadcast %66 : vector<8x1xf32> to vector<8x8xf32>
    %68 = arith.mulf %63, %67 : vector<8x8xf32>
    %cst_28 = arith.constant dense<0.000000e+00> : vector<8x64xf32>
    %69 = tpu.matmul %68, %55, %cst_28 {dimension_numbers = #tpu.dot_dimension_numbers<[1], [0], [0], [1], [0, 0, 1, 1], [], []>} : vector<8x8xf32>, vector<8x64xf32>, vector<8x64xf32> -> vector<8x64xf32>
    %c0_29 = arith.constant 0 : index
    %c64 = arith.constant 64 : index
    %70 = vector.load %arg15[%c0_29, %c64] : memref<8x512xf32, #tpu.memory_space<vmem>>, vector<8x64xf32>
    tpu.vector_store %arg15[%c0_29, %c64], %69 {strides = array<i32>} : memref<8x512xf32, #tpu.memory_space<vmem>>, vector<8x64xf32>,
    %71 = vector.extract_strided_slice %32 {offsets = [0, 128], sizes = [8, 64], strides = [1, 1]} : vector<8x512xf32> to vector<8x64xf32>
    %72 = vector.extract_strided_slice %33 {offsets = [0, 128], sizes = [8, 64], strides = [1, 1]} : vector<8x512xf32> to vector<8x64xf32>
    %73 = vector.extract_strided_slice %34 {offsets = [0, 128], sizes = [8, 64], strides = [1, 1]} : vector<8x512xf32> to vector<8x64xf32>
    "tpu.trace_start"() <{level = 10 : i32, message = "sf,tf->st"}> : () -> ()
    %cst_30 = arith.constant dense<0.000000e+00> : vector<8x8xf32>
    %74 = tpu.matmul %71, %72, %cst_30 {dimension_numbers = #tpu.dot_dimension_numbers<[1], [1], [0], [0], [0, 0, 1, 0], [], []>} : vector<8x64xf32>, vector<8x64xf32>, vector<8x8xf32> -> vector<8x8xf32>
    "tpu.trace_stop"() : () -> ()
    %cst_31 = arith.constant 1.250000e-01 : f32
    %75 = vector.broadcast %cst_31 : f32 to vector<8x8xf32>
    %76 = arith.mulf %74, %75 : vector<8x8xf32>
    %cst_32 = arith.constant dense<0xFF800000> : vector<8xf32>
    %77 = vector.multi_reduction <maximumf>, %76, %cst_32 [1] : vector<8x8xf32> to vector<8xf32>
    %78 = vector.shape_cast %77 : vector<8xf32> to vector<8x1xf32>
    %79 = vector.broadcast %78 : vector<8x1xf32> to vector<8x8xf32>
    %80 = arith.subf %76, %79 : vector<8x8xf32>
    %81 = math.exp %80 : vector<8x8xf32>
    %cst_33 = arith.constant dense<0.000000e+00> : vector<8xf32>
    %82 = vector.multi_reduction <add>, %81, %cst_33 [1] : vector<8x8xf32> to vector<8xf32>
    %83 = vector.shape_cast %82 : vector<8xf32> to vector<8x1xf32>
    %84 = tpu.reciprocal %83 {approx = true} : vector<8x1xf32> -> vector<8x1xf32>
    %85 = vector.broadcast %84 : vector<8x1xf32> to vector<8x8xf32>
    %86 = arith.mulf %81, %85 : vector<8x8xf32>
    %cst_34 = arith.constant dense<0.000000e+00> : vector<8x64xf32>
    %87 = tpu.matmul %86, %73, %cst_34 {dimension_numbers = #tpu.dot_dimension_numbers<[1], [0], [0], [1], [0, 0, 1, 1], [], []>} : vector<8x8xf32>, vector<8x64xf32>, vector<8x64xf32> -> vector<8x64xf32>
    %c0_35 = arith.constant 0 : index
    %c128 = arith.constant 128 : index
    %88 = vector.load %arg15[%c0_35, %c128] : memref<8x512xf32, #tpu.memory_space<vmem>>, vector<8x64xf32>
    tpu.vector_store %arg15[%c0_35, %c128], %87 {strides = array<i32>} : memref<8x512xf32, #tpu.memory_space<vmem>>, vector<8x64xf32>,
    %89 = vector.extract_strided_slice %32 {offsets = [0, 192], sizes = [8, 64], strides = [1, 1]} : vector<8x512xf32> to vector<8x64xf32>
    %90 = vector.extract_strided_slice %33 {offsets = [0, 192], sizes = [8, 64], strides = [1, 1]} : vector<8x512xf32> to vector<8x64xf32>
    %91 = vector.extract_strided_slice %34 {offsets = [0, 192], sizes = [8, 64], strides = [1, 1]} : vector<8x512xf32> to vector<8x64xf32>
    "tpu.trace_start"() <{level = 10 : i32, message = "sf,tf->st"}> : () -> ()
    %cst_36 = arith.constant dense<0.000000e+00> : vector<8x8xf32>
    %92 = tpu.matmul %89, %90, %cst_36 {dimension_numbers = #tpu.dot_dimension_numbers<[1], [1], [0], [0], [0, 0, 1, 0], [], []>} : vector<8x64xf32>, vector<8x64xf32>, vector<8x8xf32> -> vector<8x8xf32>
    "tpu.trace_stop"() : () -> ()
    %cst_37 = arith.constant 1.250000e-01 : f32
    %93 = vector.broadcast %cst_37 : f32 to vector<8x8xf32>
    %94 = arith.mulf %92, %93 : vector<8x8xf32>
    %cst_38 = arith.constant dense<0xFF800000> : vector<8xf32>
    %95 = vector.multi_reduction <maximumf>, %94, %cst_38 [1] : vector<8x8xf32> to vector<8xf32>
    %96 = vector.shape_cast %95 : vector<8xf32> to vector<8x1xf32>
    %97 = vector.broadcast %96 : vector<8x1xf32> to vector<8x8xf32>
    %98 = arith.subf %94, %97 : vector<8x8xf32>
    %99 = math.exp %98 : vector<8x8xf32>
    %cst_39 = arith.constant dense<0.000000e+00> : vector<8xf32>
    %100 = vector.multi_reduction <add>, %99, %cst_39 [1] : vector<8x8xf32> to vector<8xf32>
    %101 = vector.shape_cast %100 : vector<8xf32> to vector<8x1xf32>
    %102 = tpu.reciprocal %101 {approx = true} : vector<8x1xf32> -> vector<8x1xf32>
    %103 = vector.broadcast %102 : vector<8x1xf32> to vector<8x8xf32>
    %104 = arith.mulf %99, %103 : vector<8x8xf32>
    %cst_40 = arith.constant dense<0.000000e+00> : vector<8x64xf32>
    %105 = tpu.matmul %104, %91, %cst_40 {dimension_numbers = #tpu.dot_dimension_numbers<[1], [0], [0], [1], [0, 0, 1, 1], [], []>} : vector<8x8xf32>, vector<8x64xf32>, vector<8x64xf32> -> vector<8x64xf32>
    %c0_41 = arith.constant 0 : index
    %c192 = arith.constant 192 : index
    %106 = vector.load %arg15[%c0_41, %c192] : memref<8x512xf32, #tpu.memory_space<vmem>>, vector<8x64xf32>
    tpu.vector_store %arg15[%c0_41, %c192], %105 {strides = array<i32>} : memref<8x512xf32, #tpu.memory_space<vmem>>, vector<8x64xf32>,
    %107 = vector.extract_strided_slice %32 {offsets = [0, 256], sizes = [8, 64], strides = [1, 1]} : vector<8x512xf32> to vector<8x64xf32>
    %108 = vector.extract_strided_slice %33 {offsets = [0, 256], sizes = [8, 64], strides = [1, 1]} : vector<8x512xf32> to vector<8x64xf32>
    %109 = vector.extract_strided_slice %34 {offsets = [0, 256], sizes = [8, 64], strides = [1, 1]} : vector<8x512xf32> to vector<8x64xf32>
    "tpu.trace_start"() <{level = 10 : i32, message = "sf,tf->st"}> : () -> ()
    %cst_42 = arith.constant dense<0.000000e+00> : vector<8x8xf32>
    %110 = tpu.matmul %107, %108, %cst_42 {dimension_numbers = #tpu.dot_dimension_numbers<[1], [1], [0], [0], [0, 0, 1, 0], [], []>} : vector<8x64xf32>, vector<8x64xf32>, vector<8x8xf32> -> vector<8x8xf32>
    "tpu.trace_stop"() : () -> ()
    %cst_43 = arith.constant 1.250000e-01 : f32
    %111 = vector.broadcast %cst_43 : f32 to vector<8x8xf32>
    %112 = arith.mulf %110, %111 : vector<8x8xf32>
    %cst_44 = arith.constant dense<0xFF800000> : vector<8xf32>
    %113 = vector.multi_reduction <maximumf>, %112, %cst_44 [1] : vector<8x8xf32> to vector<8xf32>
    %114 = vector.shape_cast %113 : vector<8xf32> to vector<8x1xf32>
    %115 = vector.broadcast %114 : vector<8x1xf32> to vector<8x8xf32>
    %116 = arith.subf %112, %115 : vector<8x8xf32>
    %117 = math.exp %116 : vector<8x8xf32>
    %cst_45 = arith.constant dense<0.000000e+00> : vector<8xf32>
    %118 = vector.multi_reduction <add>, %117, %cst_45 [1] : vector<8x8xf32> to vector<8xf32>
    %119 = vector.shape_cast %118 : vector<8xf32> to vector<8x1xf32>
    %120 = tpu.reciprocal %119 {approx = true} : vector<8x1xf32> -> vector<8x1xf32>
    %121 = vector.broadcast %120 : vector<8x1xf32> to vector<8x8xf32>
    %122 = arith.mulf %117, %121 : vector<8x8xf32>
    %cst_46 = arith.constant dense<0.000000e+00> : vector<8x64xf32>
    %123 = tpu.matmul %122, %109, %cst_46 {dimension_numbers = #tpu.dot_dimension_numbers<[1], [0], [0], [1], [0, 0, 1, 1], [], []>} : vector<8x8xf32>, vector<8x64xf32>, vector<8x64xf32> -> vector<8x64xf32>
    %c0_47 = arith.constant 0 : index
    %c256 = arith.constant 256 : index
    %124 = vector.load %arg15[%c0_47, %c256] : memref<8x512xf32, #tpu.memory_space<vmem>>, vector<8x64xf32>
    tpu.vector_store %arg15[%c0_47, %c256], %123 {strides = array<i32>} : memref<8x512xf32, #tpu.memory_space<vmem>>, vector<8x64xf32>,
    %125 = vector.extract_strided_slice %32 {offsets = [0, 320], sizes = [8, 64], strides = [1, 1]} : vector<8x512xf32> to vector<8x64xf32>
    %126 = vector.extract_strided_slice %33 {offsets = [0, 320], sizes = [8, 64], strides = [1, 1]} : vector<8x512xf32> to vector<8x64xf32>
    %127 = vector.extract_strided_slice %34 {offsets = [0, 320], sizes = [8, 64], strides = [1, 1]} : vector<8x512xf32> to vector<8x64xf32>
    "tpu.trace_start"() <{level = 10 : i32, message = "sf,tf->st"}> : () -> ()
    %cst_48 = arith.constant dense<0.000000e+00> : vector<8x8xf32>
    %128 = tpu.matmul %125, %126, %cst_48 {dimension_numbers = #tpu.dot_dimension_numbers<[1], [1], [0], [0], [0, 0, 1, 0], [], []>} : vector<8x64xf32>, vector<8x64xf32>, vector<8x8xf32> -> vector<8x8xf32>
    "tpu.trace_stop"() : () -> ()
    %cst_49 = arith.constant 1.250000e-01 : f32
    %129 = vector.broadcast %cst_49 : f32 to vector<8x8xf32>
    %130 = arith.mulf %128, %129 : vector<8x8xf32>
    %cst_50 = arith.constant dense<0xFF800000> : vector<8xf32>
    %131 = vector.multi_reduction <maximumf>, %130, %cst_50 [1] : vector<8x8xf32> to vector<8xf32>
    %132 = vector.shape_cast %131 : vector<8xf32> to vector<8x1xf32>
    %133 = vector.broadcast %132 : vector<8x1xf32> to vector<8x8xf32>
    %134 = arith.subf %130, %133 : vector<8x8xf32>
    %135 = math.exp %134 : vector<8x8xf32>
    %cst_51 = arith.constant dense<0.000000e+00> : vector<8xf32>
    %136 = vector.multi_reduction <add>, %135, %cst_51 [1] : vector<8x8xf32> to vector<8xf32>
    %137 = vector.shape_cast %136 : vector<8xf32> to vector<8x1xf32>
    %138 = tpu.reciprocal %137 {approx = true} : vector<8x1xf32> -> vector<8x1xf32>
    %139 = vector.broadcast %138 : vector<8x1xf32> to vector<8x8xf32>
    %140 = arith.mulf %135, %139 : vector<8x8xf32>
    %cst_52 = arith.constant dense<0.000000e+00> : vector<8x64xf32>
    %141 = tpu.matmul %140, %127, %cst_52 {dimension_numbers = #tpu.dot_dimension_numbers<[1], [0], [0], [1], [0, 0, 1, 1], [], []>} : vector<8x8xf32>, vector<8x64xf32>, vector<8x64xf32> -> vector<8x64xf32>
    %c0_53 = arith.constant 0 : index
    %c320 = arith.constant 320 : index
    %142 = vector.load %arg15[%c0_53, %c320] : memref<8x512xf32, #tpu.memory_space<vmem>>, vector<8x64xf32>
    tpu.vector_store %arg15[%c0_53, %c320], %141 {strides = array<i32>} : memref<8x512xf32, #tpu.memory_space<vmem>>, vector<8x64xf32>,
    %143 = vector.extract_strided_slice %32 {offsets = [0, 384], sizes = [8, 64], strides = [1, 1]} : vector<8x512xf32> to vector<8x64xf32>
    %144 = vector.extract_strided_slice %33 {offsets = [0, 384], sizes = [8, 64], strides = [1, 1]} : vector<8x512xf32> to vector<8x64xf32>
    %145 = vector.extract_strided_slice %34 {offsets = [0, 384], sizes = [8, 64], strides = [1, 1]} : vector<8x512xf32> to vector<8x64xf32>
    "tpu.trace_start"() <{level = 10 : i32, message = "sf,tf->st"}> : () -> ()
    %cst_54 = arith.constant dense<0.000000e+00> : vector<8x8xf32>
    %146 = tpu.matmul %143, %144, %cst_54 {dimension_numbers = #tpu.dot_dimension_numbers<[1], [1], [0], [0], [0, 0, 1, 0], [], []>} : vector<8x64xf32>, vector<8x64xf32>, vector<8x8xf32> -> vector<8x8xf32>
    "tpu.trace_stop"() : () -> ()
    %cst_55 = arith.constant 1.250000e-01 : f32
    %147 = vector.broadcast %cst_55 : f32 to vector<8x8xf32>
    %148 = arith.mulf %146, %147 : vector<8x8xf32>
    %cst_56 = arith.constant dense<0xFF800000> : vector<8xf32>
    %149 = vector.multi_reduction <maximumf>, %148, %cst_56 [1] : vector<8x8xf32> to vector<8xf32>
    %150 = vector.shape_cast %149 : vector<8xf32> to vector<8x1xf32>
    %151 = vector.broadcast %150 : vector<8x1xf32> to vector<8x8xf32>
    %152 = arith.subf %148, %151 : vector<8x8xf32>
    %153 = math.exp %152 : vector<8x8xf32>
    %cst_57 = arith.constant dense<0.000000e+00> : vector<8xf32>
    %154 = vector.multi_reduction <add>, %153, %cst_57 [1] : vector<8x8xf32> to vector<8xf32>
    %155 = vector.shape_cast %154 : vector<8xf32> to vector<8x1xf32>
    %156 = tpu.reciprocal %155 {approx = true} : vector<8x1xf32> -> vector<8x1xf32>
    %157 = vector.broadcast %156 : vector<8x1xf32> to vector<8x8xf32>
    %158 = arith.mulf %153, %157 : vector<8x8xf32>
    %cst_58 = arith.constant dense<0.000000e+00> : vector<8x64xf32>
    %159 = tpu.matmul %158, %145, %cst_58 {dimension_numbers = #tpu.dot_dimension_numbers<[1], [0], [0], [1], [0, 0, 1, 1], [], []>} : vector<8x8xf32>, vector<8x64xf32>, vector<8x64xf32> -> vector<8x64xf32>
    %c0_59 = arith.constant 0 : index
    %c384 = arith.constant 384 : index
    %160 = vector.load %arg15[%c0_59, %c384] : memref<8x512xf32, #tpu.memory_space<vmem>>, vector<8x64xf32>
    tpu.vector_store %arg15[%c0_59, %c384], %159 {strides = array<i32>} : memref<8x512xf32, #tpu.memory_space<vmem>>, vector<8x64xf32>,
    %161 = vector.extract_strided_slice %32 {offsets = [0, 448], sizes = [8, 64], strides = [1, 1]} : vector<8x512xf32> to vector<8x64xf32>
    %162 = vector.extract_strided_slice %33 {offsets = [0, 448], sizes = [8, 64], strides = [1, 1]} : vector<8x512xf32> to vector<8x64xf32>
    %163 = vector.extract_strided_slice %34 {offsets = [0, 448], sizes = [8, 64], strides = [1, 1]} : vector<8x512xf32> to vector<8x64xf32>
    "tpu.trace_start"() <{level = 10 : i32, message = "sf,tf->st"}> : () -> ()
    %cst_60 = arith.constant dense<0.000000e+00> : vector<8x8xf32>
    %164 = tpu.matmul %161, %162, %cst_60 {dimension_numbers = #tpu.dot_dimension_numbers<[1], [1], [0], [0], [0, 0, 1, 0], [], []>} : vector<8x64xf32>, vector<8x64xf32>, vector<8x8xf32> -> vector<8x8xf32>
    "tpu.trace_stop"() : () -> ()
    %cst_61 = arith.constant 1.250000e-01 : f32
    %165 = vector.broadcast %cst_61 : f32 to vector<8x8xf32>
    %166 = arith.mulf %164, %165 : vector<8x8xf32>
    %cst_62 = arith.constant dense<0xFF800000> : vector<8xf32>
    %167 = vector.multi_reduction <maximumf>, %166, %cst_62 [1] : vector<8x8xf32> to vector<8xf32>
    %168 = vector.shape_cast %167 : vector<8xf32> to vector<8x1xf32>
    %169 = vector.broadcast %168 : vector<8x1xf32> to vector<8x8xf32>
    %170 = arith.subf %166, %169 : vector<8x8xf32>
    %171 = math.exp %170 : vector<8x8xf32>
    %cst_63 = arith.constant dense<0.000000e+00> : vector<8xf32>
    %172 = vector.multi_reduction <add>, %171, %cst_63 [1] : vector<8x8xf32> to vector<8xf32>
    %173 = vector.shape_cast %172 : vector<8xf32> to vector<8x1xf32>
    %174 = tpu.reciprocal %173 {approx = true} : vector<8x1xf32> -> vector<8x1xf32>
    %175 = vector.broadcast %174 : vector<8x1xf32> to vector<8x8xf32>
    %176 = arith.mulf %171, %175 : vector<8x8xf32>
    %cst_64 = arith.constant dense<0.000000e+00> : vector<8x64xf32>
    %177 = tpu.matmul %176, %163, %cst_64 {dimension_numbers = #tpu.dot_dimension_numbers<[1], [0], [0], [1], [0, 0, 1, 1], [], []>} : vector<8x8xf32>, vector<8x64xf32>, vector<8x64xf32> -> vector<8x64xf32>
    %c0_65 = arith.constant 0 : index
    %c448 = arith.constant 448 : index
    %178 = vector.load %arg15[%c0_65, %c448] : memref<8x512xf32, #tpu.memory_space<vmem>>, vector<8x64xf32>
    tpu.vector_store %arg15[%c0_65, %c448], %177 {strides = array<i32>} : memref<8x512xf32, #tpu.memory_space<vmem>>, vector<8x64xf32>,
    %c0_66 = arith.constant 0 : index
    %c0_67 = arith.constant 0 : index
    %179 = vector.load %arg15[%c0_66, %c0_67] : memref<8x512xf32, #tpu.memory_space<vmem>>, vector<8x512xf32>
    %c0_68 = arith.constant 0 : index
    %c0_69 = arith.constant 0 : index
    %c0_70 = arith.constant 0 : index
    %180 = vector.load %arg6[%c0_68, %c0_69, %c0_70] : memref<1x512x64xf32, #tpu.memory_space<vmem>>, vector<1x512x64xf32>
    %181 = vector.shape_cast %180 : vector<1x512x64xf32> to vector<512x64xf32>
    %cst_71 = arith.constant dense<0.000000e+00> : vector<8x64xf32>
    %182 = tpu.matmul %179, %181, %cst_71 {dimension_numbers = #tpu.dot_dimension_numbers<[1], [0], [0], [1], [0, 0, 1, 1], [], []>} : vector<8x512xf32>, vector<512x64xf32>, vector<8x64xf32> -> vector<8x64xf32>
    %c0_72 = arith.constant 0 : index
    %c0_73 = arith.constant 0 : index
    %c0_74 = arith.constant 0 : index
    %183 = vector.load %arg7[%c0_72, %c0_73, %c0_74] : memref<1x1x64xf32, #tpu.memory_space<vmem>>, vector<1x1x64xf32>
    %184 = vector.shape_cast %183 : vector<1x1x64xf32> to vector<1x64xf32>
    %185 = vector.broadcast %184 : vector<1x64xf32> to vector<8x64xf32>
    %186 = arith.addf %182, %185 : vector<8x64xf32>
    %187 = arith.addf %186, %4 : vector<8x64xf32>
    %c0_75 = arith.constant 0 : index
    %c0_76 = arith.constant 0 : index
    %c0_77 = arith.constant 0 : index
    %188 = vector.load %arg8[%c0_75, %c0_76, %c0_77] : memref<1x1x64xf32, #tpu.memory_space<vmem>>, vector<1x1x64xf32>
    %189 = vector.shape_cast %188 : vector<1x1x64xf32> to vector<1x64xf32>
    %c0_78 = arith.constant 0 : index
    %c0_79 = arith.constant 0 : index
    %c0_80 = arith.constant 0 : index
    %190 = vector.load %arg9[%c0_78, %c0_79, %c0_80] : memref<1x1x64xf32, #tpu.memory_space<vmem>>, vector<1x1x64xf32>
    %191 = vector.shape_cast %190 : vector<1x1x64xf32> to vector<1x64xf32>
    %cst_81 = arith.constant dense<0.000000e+00> : vector<8xf32>
    %192 = vector.multi_reduction <add>, %187, %cst_81 [1] : vector<8x64xf32> to vector<8xf32>
    %193 = vector.shape_cast %192 : vector<8xf32> to vector<8x1xf32>
    %cst_82 = arith.constant 6.400000e+01 : f32
    %194 = vector.broadcast %cst_82 : f32 to vector<8x1xf32>
    %195 = arith.divf %193, %194 : vector<8x1xf32>
    %196 = vector.broadcast %195 : vector<8x1xf32> to vector<8x64xf32>
    %197 = arith.subf %187, %196 : vector<8x64xf32>
    %198 = arith.mulf %197, %197 : vector<8x64xf32>
    %cst_83 = arith.constant dense<0.000000e+00> : vector<8xf32>
    %199 = vector.multi_reduction <add>, %198, %cst_83 [1] : vector<8x64xf32> to vector<8xf32>
    %200 = vector.shape_cast %199 : vector<8xf32> to vector<8x1xf32>
    %cst_84 = arith.constant 6.400000e+01 : f32
    %201 = vector.broadcast %cst_84 : f32 to vector<8x1xf32>
    %202 = arith.divf %200, %201 : vector<8x1xf32>
    %cst_85 = arith.constant 9.99999974E-6 : f32
    %203 = vector.broadcast %cst_85 : f32 to vector<8x1xf32>
    %204 = arith.addf %202, %203 : vector<8x1xf32>
    %205 = math.rsqrt %204 : vector<8x1xf32>
    %206 = vector.broadcast %205 : vector<8x1xf32> to vector<8x64xf32>
    %207 = arith.mulf %197, %206 : vector<8x64xf32>
    %208 = vector.broadcast %189 : vector<1x64xf32> to vector<8x64xf32>
    %209 = arith.mulf %207, %208 : vector<8x64xf32>
    %210 = vector.broadcast %191 : vector<1x64xf32> to vector<8x64xf32>
    %211 = arith.addf %209, %210 : vector<8x64xf32>
    %c0_86 = arith.constant 0 : index
    %c0_87 = arith.constant 0 : index
    %c0_88 = arith.constant 0 : index
    %212 = vector.load %arg10[%c0_86, %c0_87, %c0_88] : memref<1x64x128xf32, #tpu.memory_space<vmem>>, vector<1x64x128xf32>
    %213 = vector.shape_cast %212 : vector<1x64x128xf32> to vector<64x128xf32>
    %cst_89 = arith.constant dense<0.000000e+00> : vector<8x128xf32>
    %214 = tpu.matmul %211, %213, %cst_89 {dimension_numbers = #tpu.dot_dimension_numbers<[1], [0], [0], [1], [0, 0, 1, 1], [], []>} : vector<8x64xf32>, vector<64x128xf32>, vector<8x128xf32> -> vector<8x128xf32>
    %c0_90 = arith.constant 0 : index
    %c0_91 = arith.constant 0 : index
    %c0_92 = arith.constant 0 : index
    %215 = vector.load %arg11[%c0_90, %c0_91, %c0_92] : memref<1x1x128xf32, #tpu.memory_space<vmem>>, vector<1x1x128xf32>
    %216 = vector.shape_cast %215 : vector<1x1x128xf32> to vector<1x128xf32>
    %217 = vector.broadcast %216 : vector<1x128xf32> to vector<8x128xf32>
    %218 = arith.addf %214, %217 : vector<8x128xf32>
    %cst_93 = arith.constant 5.000000e-01 : f32
    %219 = vector.broadcast %cst_93 : f32 to vector<8x128xf32>
    %220 = arith.mulf %219, %218 : vector<8x128xf32>
    %cst_94 = arith.constant 0.707106769 : f32
    %221 = vector.broadcast %cst_94 : f32 to vector<8x128xf32>
    %222 = arith.mulf %218, %221 : vector<8x128xf32>
    %cst_95 = arith.constant 0.000000e+00 : f32
    %223 = vector.broadcast %cst_95 : f32 to vector<8x128xf32>
    %224 = arith.cmpf olt, %222, %223 : vector<8x128xf32>
    %cst_96 = arith.constant -1.000000e+00 : f32
    %cst_97 = arith.constant 1.000000e+00 : f32
    %225 = vector.broadcast %cst_96 : f32 to vector<8x128xf32>
    %226 = vector.broadcast %cst_97 : f32 to vector<8x128xf32>
    %227 = arith.select %224, %225, %226 : vector<8x128xi1>, vector<8x128xf32>
    %228 = math.absf %222 : vector<8x128xf32>
    %cst_98 = arith.constant 0.327591091 : f32
    %229 = vector.broadcast %cst_98 : f32 to vector<8x128xf32>
    %230 = arith.mulf %229, %228 : vector<8x128xf32>
    %cst_99 = arith.constant 1.000000e+00 : f32
    %231 = vector.broadcast %cst_99 : f32 to vector<8x128xf32>
    %232 = arith.addf %231, %230 : vector<8x128xf32>
    %cst_100 = arith.constant 1.000000e+00 : f32
    %233 = vector.broadcast %cst_100 : f32 to vector<8x128xf32>
    %234 = arith.divf %233, %232 : vector<8x128xf32>
    %cst_101 = arith.constant 1.06140542 : f32
    %235 = vector.broadcast %cst_101 : f32 to vector<8x128xf32>
    %236 = arith.mulf %235, %234 : vector<8x128xf32>
    %cst_102 = arith.constant -1.45315206 : f32
    %237 = vector.broadcast %cst_102 : f32 to vector<8x128xf32>
    %238 = arith.addf %236, %237 : vector<8x128xf32>
    %239 = arith.mulf %238, %234 : vector<8x128xf32>
    %cst_103 = arith.constant 1.42141378 : f32
    %240 = vector.broadcast %cst_103 : f32 to vector<8x128xf32>
    %241 = arith.addf %239, %240 : vector<8x128xf32>
    %242 = arith.mulf %241, %234 : vector<8x128xf32>
    %cst_104 = arith.constant -0.284496725 : f32
    %243 = vector.broadcast %cst_104 : f32 to vector<8x128xf32>
    %244 = arith.addf %242, %243 : vector<8x128xf32>
    %245 = arith.mulf %244, %234 : vector<8x128xf32>
    %cst_105 = arith.constant 0.254829586 : f32
    %246 = vector.broadcast %cst_105 : f32 to vector<8x128xf32>
    %247 = arith.addf %245, %246 : vector<8x128xf32>
    %248 = arith.mulf %247, %234 : vector<8x128xf32>
    %cst_106 = arith.constant 0.000000e+00 : f32
    %249 = vector.broadcast %cst_106 : f32 to vector<8x128xf32>
    %250 = arith.subf %249, %228 : vector<8x128xf32>
    %251 = arith.mulf %250, %228 : vector<8x128xf32>
    %252 = math.exp %251 : vector<8x128xf32>
    %253 = arith.mulf %248, %252 : vector<8x128xf32>
    %cst_107 = arith.constant 1.000000e+00 : f32
    %254 = vector.broadcast %cst_107 : f32 to vector<8x128xf32>
    %255 = arith.subf %254, %253 : vector<8x128xf32>
    %256 = arith.mulf %227, %255 : vector<8x128xf32>
    %cst_108 = arith.constant 1.000000e+00 : f32
    %257 = vector.broadcast %cst_108 : f32 to vector<8x128xf32>
    %258 = arith.addf %257, %256 : vector<8x128xf32>
    %259 = arith.mulf %220, %258 : vector<8x128xf32>
    %c0_109 = arith.constant 0 : index
    %c0_110 = arith.constant 0 : index
    %c0_111 = arith.constant 0 : index
    %260 = vector.load %arg12[%c0_109, %c0_110, %c0_111] : memref<1x128x64xf32, #tpu.memory_space<vmem>>, vector<1x128x64xf32>
    %261 = vector.shape_cast %260 : vector<1x128x64xf32> to vector<128x64xf32>
    %cst_112 = arith.constant dense<0.000000e+00> : vector<8x64xf32>
    %262 = tpu.matmul %259, %261, %cst_112 {dimension_numbers = #tpu.dot_dimension_numbers<[1], [0], [0], [1], [0, 0, 1, 1], [], []>} : vector<8x128xf32>, vector<128x64xf32>, vector<8x64xf32> -> vector<8x64xf32>
    %c0_113 = arith.constant 0 : index
    %c0_114 = arith.constant 0 : index
    %c0_115 = arith.constant 0 : index
    %263 = vector.load %arg13[%c0_113, %c0_114, %c0_115] : memref<1x1x64xf32, #tpu.memory_space<vmem>>, vector<1x1x64xf32>
    %264 = vector.shape_cast %263 : vector<1x1x64xf32> to vector<1x64xf32>
    %265 = vector.broadcast %264 : vector<1x64xf32> to vector<8x64xf32>
    %266 = arith.addf %262, %265 : vector<8x64xf32>
    %267 = arith.addf %266, %187 : vector<8x64xf32>
    %268 = vector.shape_cast %267 : vector<8x64xf32> to vector<1x8x64xf32>
    %c0_116 = arith.constant 0 : index
    %c0_117 = arith.constant 0 : index
    %c0_118 = arith.constant 0 : index
    %269 = vector.load %arg14[%c0_116, %c0_117, %c0_118] : memref<1x8x64xf32, #tpu.memory_space<vmem>>, vector<1x8x64xf32>
    tpu.vector_store %arg14[%c0_116, %c0_117, %c0_118], %268 {strides = array<i32>} : memref<1x8x64xf32, #tpu.memory_space<vmem>>, vector<1x8x64xf32>,
    return
  }
  func.func @transform_0(%arg0: i32, %arg1: i32) -> (i32, i32, i32) {
    %c0_i32 = arith.constant 0 : i32
    %c0_i32_0 = arith.constant 0 : i32
    %c0_i32_1 = arith.constant 0 : i32
    return %arg0, %c0_i32, %c0_i32_0 : i32, i32, i32
  }
  func.func @transform_1(%arg0: i32, %arg1: i32) -> (i32, i32, i32) {
    %c0_i32 = arith.constant 0 : i32
    %c0_i32_0 = arith.constant 0 : i32
    %c0_i32_1 = arith.constant 0 : i32
    return %arg1, %c0_i32, %c0_i32_0 : i32, i32, i32
  }
  func.func @transform_2(%arg0: i32, %arg1: i32) -> (i32, i32, i32) {
    %c0_i32 = arith.constant 0 : i32
    %c0_i32_0 = arith.constant 0 : i32
    %c0_i32_1 = arith.constant 0 : i32
    return %arg1, %c0_i32, %c0_i32_0 : i32, i32, i32
  }
  func.func @transform_3(%arg0: i32, %arg1: i32) -> (i32, i32, i32) {
    %c0_i32 = arith.constant 0 : i32
    %c0_i32_0 = arith.constant 0 : i32
    %c0_i32_1 = arith.constant 0 : i32
    return %arg1, %c0_i32, %c0_i32_0 : i32, i32, i32
  }
  func.func @transform_4(%arg0: i32, %arg1: i32) -> (i32, i32, i32) {
    %c0_i32 = arith.constant 0 : i32
    %c0_i32_0 = arith.constant 0 : i32
    %c0_i32_1 = arith.constant 0 : i32
    return %arg1, %c0_i32, %c0_i32_0 : i32, i32, i32
  }
  func.func @transform_5(%arg0: i32, %arg1: i32) -> (i32, i32, i32) {
    %c0_i32 = arith.constant 0 : i32
    %c0_i32_0 = arith.constant 0 : i32
    %c0_i32_1 = arith.constant 0 : i32
    return %arg1, %c0_i32, %c0_i32_0 : i32, i32, i32
  }
  func.func @transform_6(%arg0: i32, %arg1: i32) -> (i32, i32, i32) {
    %c0_i32 = arith.constant 0 : i32
    %c0_i32_0 = arith.constant 0 : i32
    %c0_i32_1 = arith.constant 0 : i32
    return %arg1, %c0_i32, %c0_i32_0 : i32, i32, i32
  }
  func.func @transform_7(%arg0: i32, %arg1: i32) -> (i32, i32, i32) {
    %c0_i32 = arith.constant 0 : i32
    %c0_i32_0 = arith.constant 0 : i32
    %c0_i32_1 = arith.constant 0 : i32
    return %arg1, %c0_i32, %c0_i32_0 : i32, i32, i32
  }
  func.func @transform_8(%arg0: i32, %arg1: i32) -> (i32, i32, i32) {
    %c0_i32 = arith.constant 0 : i32
    %c0_i32_0 = arith.constant 0 : i32
    %c0_i32_1 = arith.constant 0 : i32
    return %arg1, %c0_i32, %c0_i32_0 : i32, i32, i32
  }
  func.func @transform_9(%arg0: i32, %arg1: i32) -> (i32, i32, i32) {
    %c0_i32 = arith.constant 0 : i32
    %c0_i32_0 = arith.constant 0 : i32
    %c0_i32_1 = arith.constant 0 : i32
    return %arg1, %c0_i32, %c0_i32_0 : i32, i32, i32
  }
  func.func @transform_10(%arg0: i32, %arg1: i32) -> (i32, i32, i32) {
    %c0_i32 = arith.constant 0 : i32
    %c0_i32_0 = arith.constant 0 : i32
    %c0_i32_1 = arith.constant 0 : i32
    return %arg1, %c0_i32, %c0_i32_0 : i32, i32, i32
  }
  func.func @transform_11(%arg0: i32, %arg1: i32) -> (i32, i32, i32) {
    %c0_i32 = arith.constant 0 : i32
    %c0_i32_0 = arith.constant 0 : i32
    %c0_i32_1 = arith.constant 0 : i32
    return %arg1, %c0_i32, %c0_i32_0 : i32, i32, i32
  }
  func.func @transform_12(%arg0: i32, %arg1: i32) -> (i32, i32, i32) {
    %c0_i32 = arith.constant 0 : i32
    %c0_i32_0 = arith.constant 0 : i32
    %c0_i32_1 = arith.constant 0 : i32
    return %arg0, %c0_i32, %c0_i32_0 : i32, i32, i32
  }
}

</mosaic_0001>

<bundles_post_ra>
// kernel: transformer_forward.1
= control target key start
LH: loop header
LB: loop body
LE: loop exit
PB: predicated region body
PF: predicated region fallthrough
CT: control target
= control target key end

     0   :  { %s4580_s0 = inlined_call_operand.vmem [shape: f32[2,8,64], index: 0, kind: input, shape index: {}]   ;;  %s4581_s1 = inlined_call_operand.vmem [shape: f32[8,1,64], index: 1, kind: input, shape index: {}]   ;;  %s4582_s2 = inlined_call_operand.vmem [shape: f32[8,1,64], index: 2, kind: input, shape index: {}]   ;;  %s4583_s3 = inlined_call_operand.vmem [shape: f32[8,64,1536], index: 3, kind: input, shape index: {}]   ;;  %s4584_s4 = inlined_call_operand.vmem [shape: f32[8,512,64], index: 4, kind: input, shape index: {}]   ;;  %s4585_s5 = inlined_call_operand.vmem [shape: f32[8,1,64], index: 5, kind: input, shape index: {}]   ;;  %s4586_s6 = inlined_call_operand.vmem [shape: f32[8,1,64], index: 6, kind: input, shape index: {}]   ;;  %s4587_s7 = inlined_call_operand.vmem [shape: f32[8,1,64], index: 7, kind: input, shape index: {}]   ;;  %s4588_s8 = inlined_call_operand.vmem [shape: f32[8,64,128], index: 8, kind: input, shape index: {}]   ;;  %s4589_s9 = inlined_call_operand.vmem [shape: f32[8,1,128], index: 9, kind: input, shape index: {}]   ;;  %s4590_s10 = inlined_call_operand.vmem [shape: f32[8,128,64], index: 10, kind: input, shape index: {}]   ;;  %s4591_s11 = inlined_call_operand.vmem [shape: f32[8,1,64], index: 11, kind: input, shape index: {}]   ;;  %s4592_s12 = inlined_call_operand.hbm [shape: f32[2,8,64], index: 12, kind: output, shape index: {}]  }
   0x1   :  { %4608 = sst [smem:[#allocation19_spill]] %s4580_s0 }
   0x2   :  { %4609 = sst [smem:[#allocation20_spill]] %s4583_s3 }
   0x3   :  { %4610 = sst [smem:[#allocation21_spill]] %s4592_s12 }
   0x4   :  { %17 = vsyncpa [#allocation4], 0 }
   0x5   :  { %19 = vsyncpa [#allocation4 + $0x1], 0  ;;  %s3954_s21 = smov 0   ;;  %s3956_s22 = smov 0  }
   0x6   :  { %s3958_s23 = smov 0   ;;  %s3960_s24 = smov 0  }
   0x7   :  { %s3962_s25 = smov 0   ;;  %s3964_s26 = smov 0  }
   0x8   :  { %s3966_s27 = smov 0   ;;  %s3968_s28 = smov 0  }
   0x9 LB: > { %4611 = sst [smem:[#allocation6_spill]] %s3853_s21  ;;  %s3151_s29 = sadd.s32 4294967295, %s3881_s28   ;;  %s3881_s28 = sphi %s3968_s28, %s25_s28   ;;  %s3877_s27 = sphi %s3966_s27, %s4649_s27   ;;  %s3873_s26 = sphi %s3964_s26, %s4648_s26   ;;  %s3869_s25 = sphi %s3962_s25, %s4647_s25   ;;  %s3865_s24 = sphi %s3960_s24, %s4646_s24   ;;  %s3861_s23 = sphi %s3958_s23, %s4645_s23   ;;  %s3857_s22 = sphi %s3956_s22, %s4644_s22   ;;  %s3853_s21 = sphi %s3954_s21, %s4643_s21  }
   0xa   : > { %4612 = sst [smem:[#allocation7_spill]] %s3857_s22  ;;  %s3152_s30 = sadd.s32 4294967294, %s3881_s28  }
   0xb   : > { %4613 = sst [smem:[#allocation8_spill]] %s3861_s23  ;;  %s34_s13 = sadd.s32 1, %s3873_s26 }
   0xc   : > { %4614 = sst [smem:[#allocation9_spill]] %s3865_s24  ;;  %p35_p0 = scmp.ge.s32.totalorder %s34_s13, 8 }
   0xd   : > { %4615 = sst [smem:[#allocation10_spill]] %s3869_s25  ;;  %s37_s14 = sadd.s32 1, %s3877_s27 }
   0xe   : > { %4616 = sst [smem:[#allocation11_spill]] %s3873_s26  ;;  %p366_p1 = scmp.ne.s32.totalorder %s3861_s23, %s3857_s22 }
   0xf   : > { %4617 = sst [smem:[#allocation12_spill]] %s3877_s27  ;;  %p367_p2 = scmp.eq.s32.totalorder %s3151_s29, 15 }
  0x10   : > { %4618 = sst [smem:[#allocation13_spill]] %s3881_s28  ;;  %s4651_s13 = smov (%p35_p0, %s34_s13), 0 }
  0x11   : > { %4619 = sst [smem:[#allocation14_spill]] %s4651_s13  ;;  %s4653_s14 = smov (!%p35_p0, %s37_s14), %s3877_s27 }
  0x12   : > { %p4003_p3 = por %p367_p2, %p366_p1  ;;  %p372_p4 = scmp.ne.s32.totalorder %s3857_s22, %s3853_s21 }
  0x13   : > { %p39_p5 = scmp.ge.s32.totalorder %s4653_s14, 2  ;;  %p373_p6 = scmp.eq.s32.totalorder %s3152_s30, 15 }
  0x14   : > { %s4620_s15 = scalar_select %p4003_p3, 1, 0 }
  0x15   : > { %p3155_p7 = scmp.ge.s32.totalorder %s3881_s28, 1  ;;  %p472_p8 = scmp.lt.s32.totalorder %s3881_s28, 17 }
  0x16   : > { %4621 = sst [smem:[#allocation15_spill]] %s4620_s15  ;;  %s4655_s14 = smov (%p39_p5, %s4653_s14), 0 }
  0x17   : > { %4622 = sst [smem:[#allocation16_spill]] %s4655_s14  ;;  %p4013_p9 = por %p373_p6, %p372_p4 }
  0x18   : > { %p473_p10 = pnand %p3155_p7, %p472_p8  ;;  %s353_s17 = ssub.s32 %s3877_s27, %s4655_s14 }
  0x19   : > { %s4623_s16 = scalar_select %p4013_p9, 1, 0 }
  0x1a   : > { %s356_s18 = sadd.s32 1, %s3861_s23  ;;  %p354_p11 = scmp.eq.s32.totalorder %s353_s17, 0 }
  0x1b   : > { %4624 = sst [smem:[#allocation17_spill]] %s4623_s16  ;;  %476 = sbr.rel (%p473_p10) target bundleno = 3618 (0xe22), region = 68 }
  0x1c   : > { %s4021_s19 = scalar_select %p354_p11, %s3861_s23, %s356_s18  }
  0x1d   : > { %s4594_s20 = sand.u32 (!%p473_p10), 1, %s3857_s22   ;;  %p554_p12 = scmp.lt.s32.totalorder (!%p473_p10), %s3869_s25, 1 }
  0x1e   : > { %4625 = sst [smem:[#allocation18_spill]] %s4021_s19  ;;  %s3156_s29 = sshll.u32 (!%p473_p10), %s4594_s20, 3 }
  0x1f   : > { %p558_p13 = scmp.lt.s32.totalorder (!%p473_p10), %s3865_s24, 7  ;;  %s4626_s0 = sld [smem:[#allocation19_spill]] (!%p473_p10) }
  0x20   : > { %s4627_s3 = sld [smem:[#allocation20_spill]] (!%p473_p10)  ;;  %s4087_s16 = scalar_lea.vmem (!%p473_p10), [#allocation3], %s3156_s29 }
  0x22   : > { %s555_s30 = scalar_select %p554_p12, %s3869_s25, 1 }
  0x23   : > { %s4030_s13 = scalar_select %p558_p13, %s3865_s24, 7 }
  0x24   : > { %s3157_s17 = sshll.u32 %s555_s30, 3 }
  0x25   : > { %s557_s20 = scalar_lea.vmem %s4626_s0, %s3157_s17  ;;  %s3669_s28 = smul.u32 768, %s4030_s13 }
  0x26   : > { %s3208_s12 = sshll.u32 %s4030_s13, 9  ;;  %s3209_s22 = sshll.u32 %s4030_s13, 6 }
  0x27   : > { %s4052_s14 = scalar_lea.vmem %s4627_s3, %s3669_s28  ;;  %s4057_s26 = scalar_lea.vmem %s4584_s4, %s3208_s12 }
  0x28   : > { %s590_s24 = scalar_lea.vmem %s4589_s9, %s4030_s13  ;;  %s4075_s3 = scalar_lea.vmem %s4588_s8, %s3209_s22 }
  0x29   : > { %s3210_s12 = sshll.u32 %s4030_s13, 7  ;;  %s598_s21 = scalar_lea.vmem %s4591_s11, %s4030_s13 }
  0x2a   : > { %s4081_s19 = scalar_lea.vmem %s4590_s10, %s3210_s12  ;;  %s4628_s0 = sld [smem:[#allocation9_spill]] }
  0x30   : > { %p3165_p0 = scmp.ne.s32.totalorder %s4628_s0, 0 }
  0x31   : > { %v603_v0 = vld [vmem:[%s557_s20] sm:$0xff] (!%p3165_p0)  ;;  %vm604_vm0 = vcmask (!%p3165_p0), 523264  }
  0x32   : > { %602 = sbr.rel (%p3165_p0) target bundleno = 57 (0x39), region = 72  ;;  %605 = vst.msk [vmem:[%s4087_s16] sm:$0xff] (!%p3165_p0), %vm604_vm0, %v603_v0 }
  0x39 PF: > { %v606_v1 = vld [vmem:[%s4087_s16] sm:$0xff]  ;;  %vm609_vm1 = vcmask 523264   ;;  %v641_v10 = vld [vmem:[%s4052_s14 + $0x18] sm:$0xff]  ;;  %v640_v17 = vld [vmem:[%s4052_s14 + $0x10] sm:$0xff]  ;;  %v3883_v62 = vmov 0.0   ;;  %s4629_s20 = scalar_lea.vmem %s4581_s1, %s4030_s13  ;;  %s4630_s22 = scalar_lea.vmem %s4582_s2, %s4030_s13  ;;  %vm3884_vm2 = vmmov 0  }
  0x3a   : > { %v610_v2 = vsel %vm609_vm1, %v606_v1, 0.0  ;;  %v639_v8 = vld [vmem:[%s4052_s14 + $0x8] sm:$0xff]  ;;  %v653_v12 = vld [vmem:[%s4052_s14 + $0x78] sm:$0xff]  ;;  %v638_v13 = vld [vmem:[%s4052_s14] sm:$0xff]  ;;  %801 = vmatprep.mubr.f32.mxu0 %v3883_v62  ;;  %872 = vmatprep.mubr.f32.mxu1 %v3883_v62  ;;  %vm1240_vm3 = vcmask 64512   ;;  %vm1497_vm4 = vcmask 1048064   ;;  %s4631_s28 = scalar_lea.vmem %s4585_s5, %s4030_s13  ;;  %s4632_s17 = scalar_lea.vmem %s4586_s6, %s4030_s13 }
  0x3b   : > { %611 = vadd.xlane.f32.xlu0 %v610_v2  ;;  %v651_v9 = vld [vmem:[%s4052_s14 + $0x68] sm:$0xff]  ;;  %v650_v14 = vld [vmem:[%s4052_s14 + $0x60] sm:$0xff]  ;;  %v3489_v15 = vpack.c.bf16 %v653_v12, %v641_v10  ;;  %v652_v18 = vld [vmem:[%s4052_s14 + $0x70] sm:$0xff]  ;;  %s3888_s18 = smov [#allocation3]  }
  0x3c   : > { %v3473_v11 = vpack.c.bf16 %v651_v9, %v639_v8  ;;  %v3475_v16 = vpack.c.bf16 %v650_v14, %v638_v13  ;;  %v3491_v19 = vpack.c.bf16 %v652_v18, %v640_v17  ;;  %v663_v20 = vld [vmem:[%s4052_s14 + $0xc8] sm:$0xff]  ;;  %v665_v22 = vld [vmem:[%s4052_s14 + $0xd8] sm:$0xff]  ;;  %v662_v25 = vld [vmem:[%s4052_s14 + $0xc0] sm:$0xff]  ;;  %s3791_s27 = sshll.u32 %s3888_s18, 4  ;;  %s3792_s27 = int_to_ptr.vmem [resolvable:$false] %s3791_s27 }
  0x3d   : > { %3490 = vmatprep.subr.bf16.mxu1 %v3489_v15  ;;  %v675_v21 = vld [vmem:[%s4052_s14 + $0x128] sm:$0xff]  ;;  %v677_v24 = vld [vmem:[%s4052_s14 + $0x138] sm:$0xff]  ;;  %v674_v26 = vld [vmem:[%s4052_s14 + $0x120] sm:$0xff] }
  0x3e   : > { %3474 = vmatprep.subr.bf16.mxu0 %v3473_v11  ;;  %3492 = vmatpush1.bf16.msra.mxu1 %v3491_v19  ;;  %v3477_v23 = vpack.c.bf16 %v675_v21, %v663_v20  ;;  %v3493_v27 = vpack.c.bf16 %v677_v24, %v665_v22  ;;  %v3479_v28 = vpack.c.bf16 %v674_v26, %v662_v25  ;;  %v664_v29 = vld [vmem:[%s4052_s14 + $0xd0] sm:$0xff]  ;;  %v687_v32 = vld [vmem:[%s4052_s14 + $0x188] sm:$0xff]  ;;  %v689_v34 = vld [vmem:[%s4052_s14 + $0x198] sm:$0xff] }
  0x3f   : > { %3476 = vmatpush1.bf16.msra.mxu0 %v3475_v16  ;;  %v676_v30 = vld [vmem:[%s4052_s14 + $0x130] sm:$0xff]  ;;  %v699_v33 = vld [vmem:[%s4052_s14 + $0x1e8] sm:$0xff]  ;;  %v701_v36 = vld [vmem:[%s4052_s14 + $0x1f8] sm:$0xff] }
  0x40   : > { %3478 = vmatprep.subr.bf16.mxu0 %v3477_v23  ;;  %v3495_v31 = vpack.c.bf16 %v676_v30, %v664_v29  ;;  %3494 = vmatprep.subr.bf16.mxu1 %v3493_v27  ;;  %v3481_v35 = vpack.c.bf16 %v699_v33, %v687_v32  ;;  %v686_v37 = vld [vmem:[%s4052_s14 + $0x180] sm:$0xff]  ;;  %v3497_v39 = vpack.c.bf16 %v701_v36, %v689_v34  ;;  %v688_v41 = vld [vmem:[%s4052_s14 + $0x190] sm:$0xff]  ;;  %v711_v44 = vld [vmem:[%s4052_s14 + $0x248] sm:$0xff] }
  0x41   : > { %v698_v38 = vld [vmem:[%s4052_s14 + $0x1e0] sm:$0xff]  ;;  %v700_v42 = vld [vmem:[%s4052_s14 + $0x1f0] sm:$0xff]  ;;  %v723_v45 = vld [vmem:[%s4052_s14 + $0x2a8] sm:$0xff] }
  0x42   : > { %3496 = vmatpush1.bf16.msra.mxu1 %v3495_v31  ;;  %v3483_v40 = vpack.c.bf16 %v698_v38, %v686_v37  ;;  %v3499_v43 = vpack.c.bf16 %v700_v42, %v688_v41  ;;  %v713_v46 = vld [vmem:[%s4052_s14 + $0x258] sm:$0xff]  ;;  %v3485_v47 = vpack.c.bf16 %v723_v45, %v711_v44  ;;  %v710_v49 = vld [vmem:[%s4052_s14 + $0x240] sm:$0xff]  ;;  %v712_v53 = vld [vmem:[%s4052_s14 + $0x250] sm:$0xff] }
  0x43   : > { %3480 = vmatpush1.bf16.msra.mxu0 %v3479_v28  ;;  %3498 = vmatprep.subr.bf16.mxu1 %v3497_v39  ;;  %v725_v48 = vld [vmem:[%s4052_s14 + $0x2b8] sm:$0xff]  ;;  %v722_v50 = vld [vmem:[%s4052_s14 + $0x2a0] sm:$0xff]  ;;  %v724_v54 = vld [vmem:[%s4052_s14 + $0x2b0] sm:$0xff] }
  0x44   : > { %3482 = vmatprep.subr.bf16.mxu0 %v3481_v35  ;;  %v3501_v51 = vpack.c.bf16 %v725_v48, %v713_v46  ;;  %v3487_v52 = vpack.c.bf16 %v722_v50, %v710_v49  ;;  %v3503_v55 = vpack.c.bf16 %v724_v54, %v712_v53  ;;  %v643_v56 = vld [vmem:[%s4052_s14 + $0x28] sm:$0xff]  ;;  %v645_v58 = vld [vmem:[%s4052_s14 + $0x38] sm:$0xff]  ;;  %v3166_v2 = vld [vmem:[%s4629_s20] ss:$0 sm:$0xff] }
  0x45   : > { %v655_v57 = vld [vmem:[%s4052_s14 + $0x88] sm:$0xff]  ;;  %v657_v60 = vld [vmem:[%s4052_s14 + $0x98] sm:$0xff]  ;;  %v644_v9 = vld [vmem:[%s4052_s14 + $0x30] sm:$0xff] }
  0x46   : > { %3500 = vmatpush1.bf16.msra.mxu1 %v3499_v43  ;;  %v3505_v59 = vpack.c.bf16 %v655_v57, %v643_v56  ;;  %v3521_v61 = vpack.c.bf16 %v657_v60, %v645_v58  ;;  %v656_v10 = vld [vmem:[%s4052_s14 + $0x90] sm:$0xff]  ;;  %v667_v11 = vld [vmem:[%s4052_s14 + $0xe8] sm:$0xff]  ;;  %v669_v13 = vld [vmem:[%s4052_s14 + $0xf8] sm:$0xff] }
  0x47   : > { %3484 = vmatpush1.bf16.msra.mxu0 %v3483_v40  ;;  %3502 = vmatprep.subr.bf16.mxu1 %v3501_v51  ;;  %v679_v12 = vld [vmem:[%s4052_s14 + $0x148] sm:$0xff]  ;;  %v681_v14 = vld [vmem:[%s4052_s14 + $0x158] sm:$0xff]  ;;  %v3523_v17 = vpack.c.bf16 %v656_v10, %v644_v9  ;;  %v666_v18 = vld [vmem:[%s4052_s14 + $0xe0] sm:$0xff] }
  0x48   : > { %3486 = vmatprep.subr.bf16.mxu0 %v3485_v47  ;;  %v678_v19 = vld [vmem:[%s4052_s14 + $0x140] sm:$0xff]  ;;  %v3525_v21 = vpack.c.bf16 %v681_v14, %v669_v13  ;;  %v668_v22 = vld [vmem:[%s4052_s14 + $0xf0] sm:$0xff]  ;;  %v691_v24 = vld [vmem:[%s4052_s14 + $0x1a8] sm:$0xff] }
  0x49   : > { %v680_v23 = vld [vmem:[%s4052_s14 + $0x150] sm:$0xff]  ;;  %v703_v25 = vld [vmem:[%s4052_s14 + $0x208] sm:$0xff]  ;;  %v693_v26 = vld [vmem:[%s4052_s14 + $0x1b8] sm:$0xff]  ;;  %v3511_v28 = vpack.c.bf16 %v678_v19, %v666_v18 }
  0x4a   : > { %3504 = vmatpush1.bf16.msra.mxu1 %v3503_v55  ;;  %v705_v27 = vld [vmem:[%s4052_s14 + $0x218] sm:$0xff]  ;;  %v3527_v29 = vpack.c.bf16 %v680_v23, %v668_v22  ;;  %v690_v30 = vld [vmem:[%s4052_s14 + $0x1a0] sm:$0xff]  ;;  %v3513_v32 = vpack.c.bf16 %v703_v25, %v691_v24  ;;  %v692_v34 = vld [vmem:[%s4052_s14 + $0x1b0] sm:$0xff] }
  0x4b   : > { %3488 = vmatpush1.bf16.msra.mxu0 %v3487_v52  ;;  %3522 = vmatprep.subr.bf16.mxu1 %v3521_v61  ;;  %v702_v31 = vld [vmem:[%s4052_s14 + $0x200] sm:$0xff]  ;;  %v3529_v33 = vpack.c.bf16 %v705_v27, %v693_v26  ;;  %v704_v35 = vld [vmem:[%s4052_s14 + $0x210] sm:$0xff]  ;;  %v715_v36 = vld [vmem:[%s4052_s14 + $0x268] sm:$0xff] }
  0x4c   : > { %3506 = vmatprep.subr.bf16.mxu0 %v3505_v59  ;;  %v727_v37 = vld [vmem:[%s4052_s14 + $0x2c8] sm:$0xff]  ;;  %v717_v38 = vld [vmem:[%s4052_s14 + $0x278] sm:$0xff]  ;;  %v3515_v40 = vpack.c.bf16 %v702_v31, %v690_v30  ;;  %v3531_v41 = vpack.c.bf16 %v704_v35, %v692_v34  ;;  %v714_v42 = vld [vmem:[%s4052_s14 + $0x260] sm:$0xff] }
  0x4d   : > { %v729_v39 = vld [vmem:[%s4052_s14 + $0x2d8] sm:$0xff]  ;;  %v726_v43 = vld [vmem:[%s4052_s14 + $0x2c0] sm:$0xff]  ;;  %v3517_v44 = vpack.c.bf16 %v727_v37, %v715_v36  ;;  %v716_v46 = vld [vmem:[%s4052_s14 + $0x270] sm:$0xff] }
  0x4e   : > { %v3533_v45 = vpack.c.bf16 %v729_v39, %v717_v38  ;;  %v728_v47 = vld [vmem:[%s4052_s14 + $0x2d0] sm:$0xff]  ;;  %v647_v48 = vld [vmem:[%s4052_s14 + $0x48] sm:$0xff]  ;;  %v649_v50 = vld [vmem:[%s4052_s14 + $0x58] sm:$0xff]  ;;  %v3519_v52 = vpack.c.bf16 %v726_v43, %v714_v42 }
  0x4f   : > { %v659_v49 = vld [vmem:[%s4052_s14 + $0xa8] sm:$0xff]  ;;  %v661_v51 = vld [vmem:[%s4052_s14 + $0xb8] sm:$0xff]  ;;  %v3535_v53 = vpack.c.bf16 %v728_v47, %v716_v46  ;;  %v646_v54 = vld [vmem:[%s4052_s14 + $0x40] sm:$0xff] }
  0x50   : > { %v658_v55 = vld [vmem:[%s4052_s14 + $0xa0] sm:$0xff]  ;;  %v3537_v56 = vpack.c.bf16 %v659_v49, %v647_v48  ;;  %v3553_v57 = vpack.c.bf16 %v661_v51, %v649_v50  ;;  %v648_v58 = vld [vmem:[%s4052_s14 + $0x50] sm:$0xff]  ;;  %v671_v60 = vld [vmem:[%s4052_s14 + $0x108] sm:$0xff] }
  0x51   : > { %v660_v59 = vld [vmem:[%s4052_s14 + $0xb0] sm:$0xff]  ;;  %v683_v61 = vld [vmem:[%s4052_s14 + $0x168] sm:$0xff]  ;;  %v709_v13 = vld [vmem:[%s4052_s14 + $0x238] sm:$0xff] }
  0x52   : > { %v684_v9 = vld [vmem:[%s4052_s14 + $0x170] sm:$0xff]  ;;  %v695_v10 = vld [vmem:[%s4052_s14 + $0x1c8] sm:$0xff]  ;;  %v721_v24 = vld [vmem:[%s4052_s14 + $0x298] sm:$0xff] }
  0x53   : > { %v719_v22 = vld [vmem:[%s4052_s14 + $0x288] sm:$0xff]  ;;  %v733_v25 = vld [vmem:[%s4052_s14 + $0x2f8] sm:$0xff]  ;;  %v730_v31 = vld [vmem:[%s4052_s14 + $0x2e0] sm:$0xff] }
  0x54   : > { %v731_v23 = vld [vmem:[%s4052_s14 + $0x2e8] sm:$0xff]  ;;  %v3565_v30 = vpack.c.bf16 %v733_v25, %v721_v24 }
  0xc8   : > { %v612_v3 = vpop.xlane.xlu0 %611 }
  0xc9   : > { %v614_v4 = vmul.f32 0.015625, %v612_v3 }
  0xcb   : > { %v4093_v5 = vsub.f32 %v606_v1, %v614_v4  ;;  %v3167_v4 = vld [vmem:[%s4630_s22] ss:$0 sm:$0xff] }
  0xcd   : > { %v616_v6 = vmul.f32 %v4093_v5, %v4093_v5 }
  0xcf   : > { %v617_v7 = vsel %vm609_vm1, %v616_v6, 0.0  ;;  %v642_v6 = vld [vmem:[%s4052_s14 + $0x20] sm:$0xff] }
  0xd0   : > { %618 = vadd.xlane.f32.xlu0 %v617_v7  ;;  %v654_v7 = vld [vmem:[%s4052_s14 + $0x80] sm:$0xff] }
  0xd1   : > { %v3507_v16 = vpack.c.bf16 %v654_v7, %v642_v6  ;;  %v3541_v6 = vpack.c.bf16 %v683_v61, %v671_v60 }
 0x15d   : > { %v619_v63 = vpop.xlane.xlu0 %618 }
 0x15e   : > { %v620_v0 = vmul.f32 0.015625, %v619_v63  ;;  %v673_v63 = vld [vmem:[%s4052_s14 + $0x118] sm:$0xff] }
 0x160   : > { %v621_v1 = vadd.f32 1e-05, %v620_v0  ;;  %v685_v0 = vld [vmem:[%s4052_s14 + $0x178] sm:$0xff] }
 0x161   : > { %v3557_v7 = vpack.c.bf16 %v685_v0, %v673_v63 }
 0x162   : > { %3746 = vrsqrt.f32 %v621_v1  ;;  %v3539_v1 = vpack.c.bf16 %v658_v55, %v646_v54 }
 0x16c   : > { %v3747_v3 = vpop.eup %3746 }
 0x16d   : > { %v623_v8 = vmul.f32 %v3747_v3, %v4093_v5  ;;  %v3509_v5 = vpack.c.bf16 %v679_v12, %v667_v11  ;;  %v670_v3 = vld [vmem:[%s4052_s14 + $0x100] sm:$0xff]  ;;  %v707_v11 = vld [vmem:[%s4052_s14 + $0x228] sm:$0xff]  ;;  %v697_v12 = vld [vmem:[%s4052_s14 + $0x1d8] sm:$0xff] }
 0x16e   : > { %v3545_v18 = vpack.c.bf16 %v707_v11, %v695_v10  ;;  %v3561_v19 = vpack.c.bf16 %v709_v13, %v697_v12 }
 0x16f   : > { %v630_v15 = vmul.f32 %v3166_v2, %v623_v8  ;;  %v3555_v2 = vpack.c.bf16 %v660_v59, %v648_v58  ;;  %v672_v8 = vld [vmem:[%s4052_s14 + $0x110] sm:$0xff] }
 0x171   : > { %v4157_v20 = vadd.f32 %v3167_v4, %v630_v15  ;;  %v682_v4 = vld [vmem:[%s4052_s14 + $0x160] sm:$0xff]  ;;  %v3559_v15 = vpack.c.bf16 %v684_v9, %v672_v8 }
 0x172   : > { %v3543_v14 = vpack.c.bf16 %v682_v4, %v670_v3 }
 0x173   : > { %3168 = vmatmul.mubr.msk.f32.vlgmr.msra.gmra.mrb[0].mxu0 %vm609_vm1, %v4157_v20  ;;  %3169 = vmatmul.mubr.msk.f32.vlgmr.msra.gmra.mrb[0].mxu1 %vm609_vm1, %v4157_v20 }
 0x174   : > { %3508 = vmatpush1.bf16.msra.mxu0 %v3507_v16  ;;  %3524 = vmatpush1.bf16.msra.mxu1 %v3523_v17  ;;  %v694_v16 = vld [vmem:[%s4052_s14 + $0x1c0] sm:$0xff] }
 0x175   : > { %3510 = vmatprep.subr.bf16.mxu0 %v3509_v5  ;;  %3526 = vmatprep.subr.bf16.mxu1 %v3525_v21  ;;  %v706_v17 = vld [vmem:[%s4052_s14 + $0x220] sm:$0xff]  ;;  %v696_v5 = vld [vmem:[%s4052_s14 + $0x1d0] sm:$0xff] }
 0x176   : > { %943 = vmatprep.mubr.f32.mxu0 %v3883_v62  ;;  %1014 = vmatprep.mubr.f32.mxu1 %v3883_v62  ;;  %v708_v21 = vld [vmem:[%s4052_s14 + $0x230] sm:$0xff]  ;;  %v3547_v26 = vpack.c.bf16 %v706_v17, %v694_v16 }
 0x177   : > { %v3563_v27 = vpack.c.bf16 %v708_v21, %v696_v5 }
 0x178   : > { %3512 = vmatpush1.bf16.msra.mxu0 %v3511_v28  ;;  %3528 = vmatpush1.bf16.msra.mxu1 %v3527_v29  ;;  %v718_v28 = vld [vmem:[%s4052_s14 + $0x280] sm:$0xff]  ;;  %v3549_v29 = vpack.c.bf16 %v731_v23, %v719_v22 }
 0x179   : > { %3514 = vmatprep.subr.bf16.mxu0 %v3513_v32  ;;  %3530 = vmatprep.subr.bf16.mxu1 %v3529_v33  ;;  %v720_v32 = vld [vmem:[%s4052_s14 + $0x290] sm:$0xff]  ;;  %v3551_v34 = vpack.c.bf16 %v730_v31, %v718_v28 }
 0x17a   : > { %v732_v33 = vld [vmem:[%s4052_s14 + $0x2f0] sm:$0xff]  ;;  %s3885_s14 = smov 64  }
 0x17b   : > { %v3567_v35 = vpack.c.bf16 %v732_v33, %v720_v32 }
 0x17c   : > { %3516 = vmatpush1.bf16.msra.mxu0 %v3515_v40  ;;  %3532 = vmatpush1.bf16.msra.mxu1 %v3531_v41 }
 0x17d   : > { %3518 = vmatprep.subr.bf16.mxu0 %v3517_v44  ;;  %3534 = vmatprep.subr.bf16.mxu1 %v3533_v45 }
 0x180   : > { %3520 = vmatpush1.bf16.msra.mxu0 %v3519_v52  ;;  %3536 = vmatpush1.bf16.msra.mxu1 %v3535_v53 }
 0x181   : > { %3538 = vmatprep.subr.bf16.mxu0 %v3537_v56  ;;  %3554 = vmatprep.subr.bf16.mxu1 %v3553_v57 }
 0x183   : > { %3170 = vmatmul.mubr.msk.f32.vlgmr.msra.gmra.mrb[2].mxu0 %vm609_vm1, %v4157_v20  ;;  %3171 = vmatmul.mubr.msk.f32.vlgmr.msra.gmra.mrb[2].mxu1 %vm609_vm1, %v4157_v20 }
 0x184   : > { %3540 = vmatpush1.bf16.msra.mxu0 %v3539_v1  ;;  %3556 = vmatpush1.bf16.msra.mxu1 %v3555_v2 }
 0x185   : > { %3542 = vmatprep.subr.bf16.mxu0 %v3541_v6  ;;  %3558 = vmatprep.subr.bf16.mxu1 %v3557_v7 }
 0x186   : > { %1085 = vmatprep.mubr.f32.mxu0 %v3883_v62  ;;  %1156 = vmatprep.mubr.f32.mxu1 %v3883_v62 }
 0x188   : > { %3544 = vmatpush1.bf16.msra.mxu0 %v3543_v14  ;;  %3560 = vmatpush1.bf16.msra.mxu1 %v3559_v15 }
 0x189   : > { %3546 = vmatprep.subr.bf16.mxu0 %v3545_v18  ;;  %3562 = vmatprep.subr.bf16.mxu1 %v3561_v19 }
 0x18c   : > { %3548 = vmatpush1.bf16.msra.mxu0 %v3547_v26  ;;  %3564 = vmatpush1.bf16.msra.mxu1 %v3563_v27 }
 0x18d   : > { %3550 = vmatprep.subr.bf16.mxu0 %v3549_v29  ;;  %3566 = vmatprep.subr.bf16.mxu1 %v3565_v30 }
 0x190   : > { %3552 = vmatpush1.bf16.msra.mxu0 %v3551_v34  ;;  %3568 = vmatpush1.bf16.msra.mxu1 %v3567_v35 }
 0x191   : > { %3339 = vmatprep.subr.mxu0 %v3883_v62  ;;  %3364 = vmatprep.subr.mxu1 %v3883_v62 }
 0x193   : > { %3172 = vmatmul.mubr.msk.f32.vlgmr.msra.gmra.mrb[4].mxu0 %vm609_vm1, %v4157_v20  ;;  %3173 = vmatmul.mubr.msk.f32.vlgmr.msra.gmra.mrb[4].mxu1 %vm609_vm1, %v4157_v20 }
 0x194   : > { %3341 = vmatprep.mubr.msk.f32.mxu0 %vm3884_vm2, %v3883_v62  ;;  %3366 = vmatprep.mubr.msk.f32.mxu1 %vm3884_vm2, %v3883_v62 }
 0x246   : > { %v803_v36 = vpop.f32.mrb[0].mxu0  ;;  %v4231_v37 = vpop.f32.mrb[0].mxu1 }
 0x247   : > { %v4233_v38 = vpop.f32.mrb[1].mxu0  ;;  %v4235_v39 = vpop.f32.mrb[1].mxu1 }
 0x256   : > { %v945_v40 = vpop.f32.mrb[2].mxu0  ;;  %v4237_v41 = vpop.f32.mrb[2].mxu1 }
 0x257   : > { %v4239_v42 = vpop.f32.mrb[3].mxu1  ;;  %1328 = vrot.lane.b32.xlu0 %v945_v40, %s3885_s14  ;;  %v4242_v20 = vpop.f32.mrb[3].mxu0  ;;  %3340 = vmatpush3.xpose.msk.msra.mxu0 %vm609_vm1, %v945_v40 }
 0x258   : > { %3344 = vmatprep.subr.mxu0 %v3883_v62 }
 0x25a   : > { %3342 = vmatmul.mubr.msk.f32.vlgmr.msra.gmra.mrb[6].mxu0 %vm609_vm1, %v803_v36 }
 0x25b   : > { %3346 = vmatprep.mubr.msk.f32.mxu0 %vm3884_vm2, %v3883_v62 }
 0x266   : > { %v1087_v43 = vpop.f32.mrb[4].mxu0  ;;  %v4249_v44 = vpop.f32.mrb[4].mxu1 }
 0x267   : > { %v4251_v45 = vpop.f32.mrb[5].mxu0  ;;  %v4253_v46 = vpop.f32.mrb[5].mxu1  ;;  %3345 = vmatpush3.msra.mxu0 %v1087_v43 }
 0x268   : > { %3365 = vmatpush3.msra.mxu1 %v4251_v45  ;;  %3349 = vmatprep.subr.mxu0 %v3883_v62 }
 0x269   : > { %3374 = vmatprep.subr.mxu1 %v3883_v62 }
 0x2c9   : > { %v1329_v59 = vpop.permute.xlu0 %1328 }
 0x32d   : > { %v1235_v47 = vpop.f32.mrb[6].mxu0 }
 0x32e   : > { %v1239_v48 = vmul.f32 0.125, %v1235_v47  ;;  %v3343_v49 = vpop.f32.mrb[7].mxu0 }
 0x330   : > { %v1241_v50 = vsel %vm1240_vm3, %v1239_v48, -inf }
 0x331   : > { %1242 = vmax.xlane.f32.xlu1 %v1241_v50 }
 0x3be   : > { %v1243_v51 = vpop.xlane.xlu1 %1242 }
 0x3bf   : > { %v1244_v52 = vsub.f32 %v1239_v48, %v1243_v51 }
 0x3c1   : > { %v1245_v53 = vmul.f32 1.442695, %v1244_v52 }
 0x3c3   : > { %3748 = vpow2.f32 %v1245_v53 }
 0x3cd   : > { %v3749_v54 = vpop.eup %3748 }
 0x3ce   : > { %v1247_v55 = vsel %vm1240_vm3, %v3749_v54, 0.0 }
 0x3cf   : > { %1248 = vadd.xlane.f32.xlu1 %v1247_v55 }
 0x3e0   : > { %1326 = vrot.lane.b32.xlu1 %v803_v36, %s3885_s14 }
 0x45c   : > { %v1249_v56 = vpop.xlane.xlu1 %1248 }
 0x45d   : > { %3750 = vrcp.f32 %v1249_v56 }
 0x460   : > { %v1327_v60 = vpop.permute.xlu1 %1326 }
 0x467   : > { %v3751_v57 = vpop.eup %3750 }
 0x468   : > { %v1251_v58 = vmul.f32 %v3751_v57, %v3749_v54 }
 0x46a   : > { %3347 = vmatmul.mubr.msk.f32.vlgmr.msra.gmra.mrb[8].mxu0 %vm1240_vm3, %v1251_v58 }
 0x46b   : > { %3350 = vmatpush3.xpose.msk.msra.mxu0 %vm609_vm1, %v1329_v59  ;;  %3351 = vmatprep.mubr.msk.f32.mxu0 %vm3884_vm2, %v3883_v62 }
 0x46c   : > { %3354 = vmatprep.subr.mxu0 %v3883_v62 }
 0x46e   : > { %3352 = vmatmul.mubr.msk.f32.vlgmr.msra.gmra.mrb[10].mxu0 %vm609_vm1, %v1327_v60 }
 0x46f   : > { %3356 = vmatprep.mubr.msk.f32.mxu0 %vm3884_vm2, %v3883_v62 }
 0x53d   : > { %v1321_v61 = vpop.f32.mrb[8].mxu0 }
 0x53e   : > { %1325 = vst.msk [vmem:[#allocation2] sm:$0xff] %vm609_vm1, %v1321_v61  ;;  %v3348_v63 = vpop.f32.mrb[9].mxu0 }
 0x541   : > { %v1400_v0 = vpop.f32.mrb[10].mxu0 }
 0x542   : > { %v1404_v1 = vmul.f32 0.125, %v1400_v0  ;;  %v3353_v2 = vpop.f32.mrb[11].mxu0 }
 0x544   : > { %v1405_v3 = vsel %vm1240_vm3, %v1404_v1, -inf }
 0x545   : > { %1406 = vmax.xlane.f32.xlu1 %v1405_v3 }
 0x556   : > { %1663 = vrot.lane.b32.xlu1 %v4242_v20, %s3885_s14 }
 0x55a   : > { %1661 = vrot.lane.b32.xlu1 %v4233_v38, %s3885_s14 }
 0x55e   : > { %1997 = vrot.lane.b32.xlu1 %v4237_v41, %s3885_s14 }
 0x562   : > { %2331 = vrot.lane.b32.xlu1 %v4239_v42, %s3885_s14 }
 0x5d2   : > { %v1407_v4 = vpop.xlane.xlu1 %1406 }
 0x5d3   : > { %v1408_v6 = vsub.f32 %v1404_v1, %v1407_v4 }
 0x5d5   : > { %v1409_v7 = vmul.f32 1.442695, %v1408_v6 }
 0x5d6   : > { %v1664_v14 = vpop.permute.xlu1 %1663 }
 0x5d7   : > { %3752 = vpow2.f32 %v1409_v7 }
 0x5da   : > { %v1662_v15 = vpop.permute.xlu1 %1661 }
 0x5de   : > { %v1998_v16 = vpop.permute.xlu1 %1997 }
 0x5e1   : > { %v3753_v8 = vpop.eup %3752 }
 0x5e2   : > { %v1411_v9 = vsel %vm1240_vm3, %v3753_v8, 0.0  ;;  %v2332_v18 = vpop.permute.xlu1 %2331 }
 0x5e3   : > { %1412 = vadd.xlane.f32.xlu0 %v1411_v9 }
 0x5f9   : > { %1417 = vrot.lane.b32.xlu0 %v1087_v43, %s3885_s14 }
 0x5fd   : > { %1995 = vrot.lane.b32.xlu0 %v4231_v37, %s3885_s14 }
 0x601   : > { %2329 = vrot.lane.b32.xlu0 %v4235_v39, %s3885_s14 }
 0x670   : > { %v1413_v10 = vpop.xlane.xlu0 %1412 }
 0x671   : > { %3754 = vrcp.f32 %v1413_v10 }
 0x674   : > { %v1418_v11 = vpop.permute.xlu0 %1417 }
 0x675   : > { %3355 = vmatpush3.msra.mxu0 %v1418_v11 }
 0x676   : > { %3359 = vmatprep.subr.mxu0 %v3883_v62 }
 0x678   : > { %v1996_v17 = vpop.permute.xlu0 %1995 }
 0x67b   : > { %v3755_v12 = vpop.eup %3754 }
 0x67c   : > { %v1415_v13 = vmul.f32 %v3755_v12, %v3753_v8  ;;  %v2330_v19 = vpop.permute.xlu0 %2329 }
 0x67e   : > { %3357 = vmatmul.mubr.msk.f32.vlgmr.msra.gmra.mrb[12].mxu0 %vm1240_vm3, %v1415_v13 }
 0x67f   : > { %3360 = vmatpush3.xpose.msk.msra.mxu0 %vm609_vm1, %v4242_v20  ;;  %3361 = vmatprep.mubr.msk.f32.mxu0 %vm3884_vm2, %v3883_v62 }
 0x680   : > { %3369 = vmatprep.subr.mxu0 %v3883_v62 }
 0x682   : > { %3362 = vmatmul.mubr.msk.f32.vlgmr.msra.gmra.mrb[14].mxu0 %vm609_vm1, %v4233_v38 }
 0x683   : > { %3370 = vmatpush3.xpose.msk.msra.mxu0 %vm609_vm1, %v1664_v14  ;;  %3371 = vmatprep.mubr.msk.f32.mxu0 %vm3884_vm2, %v3883_v62 }
 0x684   : > { %3379 = vmatprep.subr.mxu0 %v3883_v62 }
 0x686   : > { %3372 = vmatmul.mubr.msk.f32.vlgmr.msra.gmra.mrb[16].mxu0 %vm609_vm1, %v1662_v15 }
 0x687   : > { %3380 = vmatpush3.xpose.msk.msra.mxu0 %vm609_vm1, %v4237_v41  ;;  %3381 = vmatprep.mubr.msk.f32.mxu0 %vm3884_vm2, %v3883_v62 }
 0x688   : > { %3389 = vmatprep.subr.mxu0 %v3883_v62 }
 0x68a   : > { %3382 = vmatmul.mubr.msk.f32.vlgmr.msra.gmra.mrb[18].mxu0 %vm609_vm1, %v4231_v37 }
 0x68b   : > { %3390 = vmatpush3.xpose.msk.msra.mxu0 %vm609_vm1, %v1998_v16  ;;  %3391 = vmatprep.mubr.msk.f32.mxu0 %vm3884_vm2, %v3883_v62 }
 0x68c   : > { %3399 = vmatprep.subr.mxu0 %v3883_v62 }
 0x68e   : > { %3392 = vmatmul.mubr.msk.f32.vlgmr.msra.gmra.mrb[20].mxu0 %vm609_vm1, %v1996_v17 }
 0x68f   : > { %3400 = vmatpush3.xpose.msk.msra.mxu0 %vm609_vm1, %v4239_v42  ;;  %3401 = vmatprep.mubr.msk.f32.mxu0 %vm3884_vm2, %v3883_v62 }
 0x690   : > { %3409 = vmatprep.subr.mxu0 %v3883_v62 }
 0x692   : > { %3402 = vmatmul.mubr.msk.f32.vlgmr.msra.gmra.mrb[22].mxu0 %vm609_vm1, %v4235_v39 }
 0x693   : > { %3410 = vmatpush3.xpose.msk.msra.mxu0 %vm609_vm1, %v2332_v18  ;;  %3411 = vmatprep.mubr.msk.f32.mxu0 %vm3884_vm2, %v3883_v62 }
 0x696   : > { %3412 = vmatmul.mubr.msk.f32.vlgmr.msra.gmra.mrb[24].mxu0 %vm609_vm1, %v2330_v19 }
 0x751   : > { %v4322_v5 = vpop.f32.mrb[12].mxu0 }
 0x752   : > { %v3358_v21 = vpop.f32.mrb[13].mxu0 }
 0x755   : > { %v1571_v22 = vpop.f32.mrb[14].mxu0 }
 0x756   : > { %v1575_v23 = vmul.f32 0.125, %v1571_v22  ;;  %v3363_v24 = vpop.f32.mrb[15].mxu0 }
 0x758   : > { %v1576_v25 = vsel %vm1240_vm3, %v1575_v23, -inf }
 0x759   : > { %1577 = vmax.xlane.f32.xlu1 %v1576_v25  ;;  %v1735_v26 = vpop.f32.mrb[16].mxu0 }
 0x75a   : > { %v1739_v27 = vmul.f32 0.125, %v1735_v26  ;;  %v3373_v28 = vpop.f32.mrb[17].mxu0 }
 0x75c   : > { %v1740_v29 = vsel %vm1240_vm3, %v1739_v27, -inf }
 0x75d   : > { %1741 = vmax.xlane.f32.xlu0 %v1740_v29  ;;  %v1905_v30 = vpop.f32.mrb[18].mxu0 }
 0x75e   : > { %v1909_v31 = vmul.f32 0.125, %v1905_v30  ;;  %v3383_v32 = vpop.f32.mrb[19].mxu0 }
 0x760   : > { %v1910_v33 = vsel %vm1240_vm3, %v1909_v31, -inf }
 0x761   : > { %1911 = vmax.xlane.f32.xlu0 %v1910_v33  ;;  %v2069_v34 = vpop.f32.mrb[20].mxu0 }
 0x762   : > { %v2073_v35 = vmul.f32 0.125, %v2069_v34  ;;  %v3393_v36 = vpop.f32.mrb[21].mxu0 }
 0x763   : > { %v2522_v36 = vld [vmem:[%s4057_s26 + $0x88] sm:$0xff] }
 0x764   : > { %v2074_v37 = vsel %vm1240_vm3, %v2073_v35, -inf }
 0x765   : > { %2075 = vmax.xlane.f32.xlu0 %v2074_v37  ;;  %v2239_v38 = vpop.f32.mrb[22].mxu0  ;;  %v2505_v37 = vld [vmem:[%s4057_s26] sm:$0xff] }
 0x766   : > { %v2243_v39 = vmul.f32 0.125, %v2239_v38  ;;  %v3403_v40 = vpop.f32.mrb[23].mxu0 }
 0x767   : > { %v2523_v40 = vld [vmem:[%s4057_s26 + $0x90] sm:$0xff] }
 0x768   : > { %v2244_v41 = vsel %vm1240_vm3, %v2243_v39, -inf }
 0x769   : > { %2245 = vmax.xlane.f32.xlu1 %v2244_v41  ;;  %v2403_v42 = vpop.f32.mrb[24].mxu0  ;;  %v2524_v41 = vld [vmem:[%s4057_s26 + $0x98] sm:$0xff] }
 0x76a   : > { %v2407_v20 = vmul.f32 0.125, %v2403_v42  ;;  %v3413_v43 = vpop.f32.mrb[25].mxu0 }
 0x76b   : > { %v2507_v43 = vld [vmem:[%s4057_s26 + $0x10] sm:$0xff] }
 0x76c   : > { %v2408_v47 = vsel %vm1240_vm3, %v2407_v20, -inf }
 0x76d   : > { %2409 = vmax.xlane.f32.xlu0 %v2408_v47  ;;  %v2508_v47 = vld [vmem:[%s4057_s26 + $0x18] sm:$0xff] }
 0x7e6   : > { %v1578_v48 = vpop.xlane.xlu1 %1577 }
 0x7e7   : > { %v1579_v49 = vsub.f32 %v1575_v23, %v1578_v48  ;;  %v2525_v48 = vld [vmem:[%s4057_s26 + $0xa0] sm:$0xff] }
 0x7e9   : > { %v1580_v50 = vmul.f32 1.442695, %v1579_v49  ;;  %v2526_v49 = vld [vmem:[%s4057_s26 + $0xa8] sm:$0xff] }
 0x7ea   : > { %v1742_v51 = vpop.xlane.xlu0 %1741 }
 0x7eb   : > { %3756 = vpow2.f32 %v1580_v50  ;;  %v1743_v52 = vsub.f32 %v1739_v27, %v1742_v51  ;;  %v3575_v50 = vpack.c.bf16 %v2508_v47, %v2507_v43  ;;  %v3577_v51 = vpack.c.bf16 %v2526_v49, %v2525_v48  ;;  %v2543_v47 = vld [vmem:[%s4057_s26 + $0x130] sm:$0xff]  ;;  %v2544_v48 = vld [vmem:[%s4057_s26 + $0x138] sm:$0xff] }
 0x7ec   : > { %v3615_v49 = vpack.c.bf16 %v2544_v48, %v2543_v47  ;;  %v2749_v47 = vld [vmem:[%s4075_s3 + $0x18] sm:$0xff] }
 0x7ed   : > { %v1744_v53 = vmul.f32 1.442695, %v1743_v52  ;;  %v2509_v52 = vld [vmem:[%s4057_s26 + $0x20] sm:$0xff] }
 0x7ee   : > { %v1912_v54 = vpop.xlane.xlu0 %1911 }
 0x7ef   : > { %3758 = vpow2.f32 %v1744_v53  ;;  %v1913_v7 = vsub.f32 %v1909_v31, %v1912_v54  ;;  %v2510_v53 = vld [vmem:[%s4057_s26 + $0x28] sm:$0xff]  ;;  %v2527_v54 = vld [vmem:[%s4057_s26 + $0xb0] sm:$0xff] }
 0x7f1   : > { %v1914_v9 = vmul.f32 1.442695, %v1913_v7 }
 0x7f2   : > { %v2076_v55 = vpop.xlane.xlu0 %2075 }
 0x7f3   : > { %v2077_v56 = vsub.f32 %v2073_v35, %v2076_v55  ;;  %v2521_v35 = vld [vmem:[%s4057_s26 + $0x80] sm:$0xff]  ;;  %v2528_v55 = vld [vmem:[%s4057_s26 + $0xb8] sm:$0xff] }
 0x7f4   : > { %v3569_v38 = vpack.c.bf16 %v2522_v36, %v2521_v35  ;;  %v2558_v35 = vld [vmem:[%s4057_s26 + $0x1a8] sm:$0xff] }
 0x7f5   : > { %v3757_v57 = vpop.eup %3756  ;;  %v2078_v58 = vmul.f32 1.442695, %v2077_v56  ;;  %v3579_v56 = vpack.c.bf16 %v2510_v53, %v2509_v52  ;;  %v2545_v53 = vld [vmem:[%s4057_s26 + $0x140] sm:$0xff] }
 0x7f6   : > { %v1582_v59 = vsel %vm1240_vm3, %v3757_v57, 0.0  ;;  %v2246_v8 = vpop.xlane.xlu1 %2245  ;;  %3570 = vmatprep.subr.bf16.mxu0 %v3569_v38 }
 0x7f7   : > { %3760 = vpow2.f32 %v2078_v58  ;;  %1583 = vadd.xlane.f32.xlu1 %v1582_v59  ;;  %v2247_v10 = vsub.f32 %v2243_v39, %v2246_v8  ;;  %v2506_v39 = vld [vmem:[%s4057_s26 + $0x8] sm:$0xff]  ;;  %v2511_v58 = vld [vmem:[%s4057_s26 + $0x30] sm:$0xff]  ;;  %v2512_v59 = vld [vmem:[%s4057_s26 + $0x38] sm:$0xff] }
 0x7f8   : > { %v3571_v42 = vpack.c.bf16 %v2506_v39, %v2505_v37  ;;  %v2515_v8 = vld [vmem:[%s4057_s26 + $0x50] sm:$0xff]  ;;  %v2541_v39 = vld [vmem:[%s4057_s26 + $0x120] sm:$0xff] }
 0x7f9   : > { %v3759_v60 = vpop.eup %3758  ;;  %v2248_v11 = vmul.f32 1.442695, %v2247_v10 }
 0x7fa   : > { %v2410_v61 = vpop.xlane.xlu0 %2409  ;;  %v1746_v63 = vsel %vm1240_vm3, %v3759_v60, 0.0  ;;  %3572 = vmatpush3.bf16.msra.mxu0 %v3571_v42  ;;  %v2560_v42 = vld [vmem:[%s4057_s26 + $0x1b8] sm:$0xff] }
 0x7fb   : > { %v2411_v0 = vsub.f32 %v2407_v20, %v2410_v61  ;;  %1747 = vadd.xlane.f32.xlu0 %v1746_v63  ;;  %v3573_v20 = vpack.c.bf16 %v2524_v41, %v2523_v40  ;;  %v2530_v61 = vld [vmem:[%s4057_s26 + $0xc8] sm:$0xff]  ;;  %v3583_v63 = vpack.c.bf16 %v2512_v59, %v2511_v58  ;;  %v2559_v41 = vld [vmem:[%s4057_s26 + $0x1b0] sm:$0xff]  ;;  %v2548_v59 = vld [vmem:[%s4057_s26 + $0x158] sm:$0xff] }
 0x7fc   : > { %v2542_v40 = vld [vmem:[%s4057_s26 + $0x128] sm:$0xff]  ;;  %v3613_v43 = vpack.c.bf16 %v2560_v42, %v2559_v41  ;;  %v2547_v58 = vld [vmem:[%s4057_s26 + $0x150] sm:$0xff] }
 0x7fd   : > { %v2412_v1 = vmul.f32 1.442695, %v2411_v0  ;;  %3574 = vmatprep.subr.bf16.mxu0 %v3573_v20  ;;  %v3611_v20 = vpack.c.bf16 %v2542_v40, %v2541_v39  ;;  %v2746_v40 = vld [vmem:[%s4075_s3] sm:$0xff]  ;;  %v2747_v41 = vld [vmem:[%s4075_s3 + $0x8] sm:$0xff] }
 0x7fe   : > { %3576 = vmatpush3.bf16.msra.mxu0 %v3575_v50  ;;  %v2561_v50 = vld [vmem:[%s4057_s26 + $0x1c0] sm:$0xff]  ;;  %v3634_v42 = vpack.c.bf16 %v2747_v41, %v2746_v40 }
 0x7ff   : > { %3762 = vpow2.f32 %v2412_v1  ;;  %3578 = vmatprep.subr.bf16.mxu0 %v3577_v51  ;;  %v2513_v1 = vld [vmem:[%s4057_s26 + $0x40] sm:$0xff]  ;;  %v2562_v51 = vld [vmem:[%s4057_s26 + $0x1c8] sm:$0xff] }
 0x800   : > { %3764 = vpow2.f32 %v1914_v9  ;;  %v2516_v9 = vld [vmem:[%s4057_s26 + $0x58] sm:$0xff]  ;;  %v3617_v52 = vpack.c.bf16 %v2562_v51, %v2561_v50  ;;  %v2751_v50 = vld [vmem:[%s4075_s3 + $0x28] sm:$0xff] }
 0x801   : > { %v3761_v2 = vpop.eup %3760  ;;  %3766 = vpow2.f32 %v2248_v11  ;;  %v3591_v10 = vpack.c.bf16 %v2516_v9, %v2515_v8  ;;  %v2533_v11 = vld [vmem:[%s4057_s26 + $0xe0] sm:$0xff]  ;;  %v2568_v9 = vld [vmem:[%s4057_s26 + $0x1f8] sm:$0xff] }
 0x802   : > { %v2080_v3 = vsel %vm1240_vm3, %v3761_v2, 0.0  ;;  %3580 = vmatpush3.bf16.msra.mxu0 %v3579_v56 }
 0x803   : > { %2081 = vadd.xlane.f32.xlu0 %v2080_v3  ;;  %v2531_v3 = vld [vmem:[%s4057_s26 + $0xd0] sm:$0xff] }
 0x808   : > { %1752 = vrot.lane.b32.xlu1 %v4251_v45, %s3885_s14 }
 0x809   : > { %v4335_v4 = vpop.eup %3762 }
 0x80a   : > { %v2414_v6 = vsel %vm1240_vm3, %v4335_v4, 0.0  ;;  %v3765_v12 = vpop.eup %3764 }
 0x80b   : > { %2415 = vadd.xlane.f32.xlu0 %v2414_v6  ;;  %v1916_v13 = vsel %vm1240_vm3, %v3765_v12, 0.0  ;;  %v3767_v45 = vpop.eup %3766 }
 0x80c   : > { %v2250_v14 = vsel %vm1240_vm3, %v3767_v45, 0.0 }
 0x821   : > { %2086 = vrot.lane.b32.xlu0 %v4249_v44, %s3885_s14 }
 0x82c   : > { %1917 = vadd.xlane.f32.xlu1 %v1916_v13 }
 0x830   : > { %2251 = vadd.xlane.f32.xlu1 %v2250_v14  ;;  %v2518_v14 = vld [vmem:[%s4057_s26 + $0x68] sm:$0xff] }
 0x841   : > { %2420 = vrot.lane.b32.xlu1 %v4253_v46, %s3885_s14 }
 0x845   : > { %1494 = vrot.lane.b32.xlu1 %v4322_v5, %s3885_s14 }
 0x884   : > { %v1584_v15 = vpop.xlane.xlu1 %1583 }
 0x885   : > { %3768 = vrcp.f32 %v1584_v15  ;;  %v2535_v15 = vld [vmem:[%s4057_s26 + $0xf0] sm:$0xff] }
 0x888   : > { %v1748_v16 = vpop.xlane.xlu0 %1747  ;;  %v1753_v19 = vpop.permute.xlu1 %1752 }
 0x889   : > { %3770 = vrcp.f32 %v1748_v16 }
 0x88f   : > { %v3769_v17 = vpop.eup %3768 }
 0x890   : > { %v1586_v18 = vmul.f32 %v3769_v17, %v3757_v57  ;;  %v2082_v5 = vpop.xlane.xlu0 %2081  ;;  %v3581_v57 = vpack.c.bf16 %v2528_v55, %v2527_v54  ;;  %v2536_v17 = vld [vmem:[%s4057_s26 + $0xf8] sm:$0xff]  ;;  %v2546_v54 = vld [vmem:[%s4057_s26 + $0x148] sm:$0xff]  ;;  %v2563_v55 = vld [vmem:[%s4057_s26 + $0x1d0] sm:$0xff] }
 0x891   : > { %v3619_v56 = vpack.c.bf16 %v2546_v54, %v2545_v53  ;;  %v2753_v53 = vld [vmem:[%s4075_s3 + $0x38] sm:$0xff] }
 0x892   : > { %3367 = vmatmul.mubr.msk.f32.vlgmr.msra.gmra.mrb[6].mxu1 %vm1240_vm3, %v1586_v18  ;;  %3582 = vmatprep.subr.bf16.mxu0 %v3581_v57  ;;  %v2519_v18 = vld [vmem:[%s4057_s26 + $0x70] sm:$0xff]  ;;  %v2564_v57 = vld [vmem:[%s4057_s26 + $0x1d8] sm:$0xff] }
 0x893   : > { %v3771_v21 = vpop.eup %3770  ;;  %3375 = vmatpush3.msra.mxu1 %v1753_v19  ;;  %3376 = vmatprep.mubr.msk.f32.mxu1 %vm3884_vm2, %v3883_v62  ;;  %v2520_v19 = vld [vmem:[%s4057_s26 + $0x78] sm:$0xff] }
 0x894   : > { %v1750_v22 = vmul.f32 %v3771_v21, %v3759_v60  ;;  %3384 = vmatprep.subr.mxu1 %v3883_v62  ;;  %v2529_v60 = vld [vmem:[%s4057_s26 + $0xc0] sm:$0xff]  ;;  %3584 = vmatpush3.bf16.msra.mxu0 %v3583_v63  ;;  %v3597_v21 = vpack.c.bf16 %v2536_v17, %v2535_v15 }
 0x895   : > { %v3585_v0 = vpack.c.bf16 %v2530_v61, %v2529_v60  ;;  %v3621_v60 = vpack.c.bf16 %v2564_v57, %v2563_v55  ;;  %v3623_v61 = vpack.c.bf16 %v2548_v59, %v2547_v58  ;;  %v2565_v63 = vld [vmem:[%s4057_s26 + $0x1e0] sm:$0xff] }
 0x896   : > { %3377 = vmatmul.mubr.msk.f32.vlgmr.msra.gmra.mrb[8].mxu1 %vm1240_vm3, %v1750_v22  ;;  %v3599_v22 = vpack.c.bf16 %v2520_v19, %v2519_v18  ;;  %v3199_v59 = vld [vmem:[%s4632_s17] ss:$0 sm:$0xff] }
 0x897   : > { %3385 = vmatpush3.msra.mxu1 %v4249_v44  ;;  %3386 = vmatprep.mubr.msk.f32.mxu1 %vm3884_vm2, %v3883_v62 }
 0x898   : > { %3394 = vmatprep.subr.mxu1 %v3883_v62  ;;  %v2416_v25 = vpop.xlane.xlu0 %2415  ;;  %3586 = vmatprep.subr.bf16.mxu0 %v3585_v0  ;;  %v2566_v0 = vld [vmem:[%s4057_s26 + $0x1e8] sm:$0xff] }
 0x89c   : > { %v2087_v44 = vpop.permute.xlu0 %2086 }
 0x8b9   : > { %v1918_v23 = vpop.xlane.xlu1 %1917 }
 0x8ba   : > { %3772 = vrcp.f32 %v1918_v23 }
 0x8bb   : > { %3774 = vrcp.f32 %v2082_v5 }
 0x8bd   : > { %v2252_v24 = vpop.xlane.xlu1 %2251 }
 0x8be   : > { %3776 = vrcp.f32 %v2252_v24  ;;  %v2553_v24 = vld [vmem:[%s4057_s26 + $0x180] sm:$0xff] }
 0x8bf   : > { %3778 = vrcp.f32 %v2416_v25  ;;  %v2554_v25 = vld [vmem:[%s4057_s26 + $0x188] sm:$0xff] }
 0x8c1   : > { %v2421_v26 = vpop.permute.xlu1 %2420 }
 0x8c4   : > { %v3773_v27 = vpop.eup %3772 }
 0x8c5   : > { %v1920_v28 = vmul.f32 %v3773_v27, %v3765_v12  ;;  %v1495_v29 = vpop.permute.xlu1 %1494  ;;  %v3775_v30 = vpop.eup %3774  ;;  %v2534_v12 = vld [vmem:[%s4057_s26 + $0xe8] sm:$0xff]  ;;  %v3601_v27 = vpack.c.bf16 %v2554_v25, %v2553_v24 }
 0x8c6   : > { %1498 = vst.msk [vmem:[#allocation2] sm:$0xff] %vm1497_vm4, %v1495_v29  ;;  %v2084_v31 = vmul.f32 %v3775_v30, %v3761_v2  ;;  %v2514_v2 = vld [vmem:[%s4057_s26 + $0x48] sm:$0xff]  ;;  %v3593_v13 = vpack.c.bf16 %v2534_v12, %v2533_v11  ;;  %v2555_v29 = vld [vmem:[%s4057_s26 + $0x190] sm:$0xff]  ;;  %v2556_v30 = vld [vmem:[%s4057_s26 + $0x198] sm:$0xff] }
 0x8c7   : > { %3387 = vmatmul.mubr.msk.f32.vlgmr.msra.gmra.mrb[10].mxu1 %vm1240_vm3, %v1920_v28  ;;  %v3587_v6 = vpack.c.bf16 %v2514_v2, %v2513_v1  ;;  %v2538_v28 = vld [vmem:[%s4057_s26 + $0x108] sm:$0xff]  ;;  %v3625_v2 = vpack.c.bf16 %v2566_v0, %v2565_v63  ;;  %v2552_v11 = vld [vmem:[%s4057_s26 + $0x178] sm:$0xff] }
 0x8c8   : > { %3395 = vmatpush3.msra.mxu1 %v2087_v44  ;;  %3396 = vmatprep.mubr.msk.f32.mxu1 %vm3884_vm2, %v3883_v62  ;;  %v3777_v32 = vpop.eup %3776 }
 0x8c9   : > { %3404 = vmatprep.subr.mxu1 %v3883_v62  ;;  %v2254_v33 = vmul.f32 %v3777_v32, %v3767_v45  ;;  %v3779_v34 = vpop.eup %3778  ;;  %3588 = vmatpush3.bf16.msra.mxu0 %v3587_v6  ;;  %v2517_v45 = vld [vmem:[%s4057_s26 + $0x60] sm:$0xff]  ;;  %v2539_v32 = vld [vmem:[%s4057_s26 + $0x110] sm:$0xff] }
 0x8ca   : > { %v3595_v16 = vpack.c.bf16 %v2518_v14, %v2517_v45  ;;  %v2567_v6 = vld [vmem:[%s4057_s26 + $0x1f0] sm:$0xff] }
 0x8cb   : > { %3397 = vmatmul.mubr.msk.f32.vlgmr.msra.gmra.mrb[12].mxu1 %vm1240_vm3, %v2084_v31  ;;  %v3605_v31 = vpack.c.bf16 %v2556_v30, %v2555_v29  ;;  %v3629_v12 = vpack.c.bf16 %v2568_v9, %v2567_v6  ;;  %v3198_v29 = vld [vmem:[%s4631_s28] ss:$0 sm:$0xff]  ;;  %v2864_v6 = vld [vmem:[%s4081_s19 + $0x18] sm:$0xff]  ;;  %v2866_v9 = vld [vmem:[%s4081_s19 + $0x28] sm:$0xff]  ;;  %s4637_s28 = sld [smem:[#allocation21_spill]] }
 0x8cc   : > { %3405 = vmatpush3.msra.mxu1 %v4253_v46  ;;  %3406 = vmatprep.mubr.msk.f32.mxu1 %vm3884_vm2, %v3883_v62  ;;  %v2418_v46 = vmul.f32 %v3779_v34, %v4335_v4  ;;  %v2532_v4 = vld [vmem:[%s4057_s26 + $0xd8] sm:$0xff]  ;;  %v2557_v34 = vld [vmem:[%s4057_s26 + $0x1a0] sm:$0xff] }
 0x8cd   : > { %3414 = vmatprep.subr.mxu1 %v3883_v62  ;;  %v3589_v7 = vpack.c.bf16 %v2532_v4, %v2531_v3  ;;  %v3609_v38 = vpack.c.bf16 %v2558_v35, %v2557_v34  ;;  %v2549_v3 = vld [vmem:[%s4057_s26 + $0x160] sm:$0xff]  ;;  %v2550_v4 = vld [vmem:[%s4057_s26 + $0x168] sm:$0xff] }
 0x8ce   : > { %v3627_v8 = vpack.c.bf16 %v2550_v4, %v2549_v3  ;;  %v3786_v34 = vld [vmem:[%s4087_s16] sm:$0xff]  ;;  %v2863_v4 = vld [vmem:[%s4081_s19 + $0x10] sm:$0xff] }
 0x8cf   : > { %3407 = vmatmul.mubr.msk.f32.vlgmr.msra.gmra.mrb[14].mxu1 %vm1240_vm3, %v2254_v33  ;;  %3590 = vmatprep.subr.bf16.mxu0 %v3589_v7  ;;  %v2540_v33 = vld [vmem:[%s4057_s26 + $0x118] sm:$0xff] }
 0x8d0   : > { %3415 = vmatpush3.msra.mxu1 %v2421_v26  ;;  %3416 = vmatprep.mubr.msk.f32.mxu1 %vm3884_vm2, %v3883_v62  ;;  %v2537_v26 = vld [vmem:[%s4057_s26 + $0x100] sm:$0xff]  ;;  %v3607_v37 = vpack.c.bf16 %v2540_v33, %v2539_v32 }
 0x8d1   : > { %3592 = vmatpush3.bf16.msra.mxu0 %v3591_v10  ;;  %v3603_v44 = vpack.c.bf16 %v2538_v28, %v2537_v26  ;;  %3602 = vmatprep.subr.bf16.mxu1 %v3601_v27  ;;  %v2551_v10 = vld [vmem:[%s4057_s26 + $0x170] sm:$0xff]  ;;  %s4638_s30 = smov %s4637_s28 }
 0x8d2   : > { %3594 = vmatprep.subr.bf16.mxu0 %v3593_v13  ;;  %v3631_v13 = vpack.c.bf16 %v2552_v11, %v2551_v10  ;;  %v2867_v11 = vld [vmem:[%s4081_s19 + $0x30] sm:$0xff] }
 0x8d3   : > { %3417 = vmatmul.mubr.msk.f32.vlgmr.msra.gmra.mrb[16].mxu1 %vm1240_vm3, %v2418_v46 }
 0x8d4   : > { %3604 = vmatpush3.bf16.msra.mxu1 %v3603_v44 }
 0x8d5   : > { %3596 = vmatpush3.bf16.msra.mxu0 %v3595_v16  ;;  %3606 = vmatprep.subr.bf16.mxu1 %v3605_v31 }
 0x8d6   : > { %3598 = vmatprep.subr.bf16.mxu0 %v3597_v21 }
 0x8d8   : > { %3608 = vmatpush3.bf16.msra.mxu1 %v3607_v37 }
 0x8d9   : > { %3600 = vmatpush3.bf16.msra.mxu0 %v3599_v22  ;;  %3610 = vmatprep.subr.bf16.mxu1 %v3609_v38  ;;  %v2501_v22 = vld [vmem:[#allocation2] sm:$0xff] }
 0x8dc   : > { %3612 = vmatpush3.bf16.msra.mxu1 %v3611_v20  ;;  %v3886_v20 = vmov 0.0|0.0  }
 0x8dd   : > { %3614 = vmatprep.subr.bf16.mxu1 %v3613_v43  ;;  %3633 = vmatprep.subr.bf16.mxu0 %v3886_v20  ;;  %v2748_v43 = vld [vmem:[%s4075_s3 + $0x10] sm:$0xff] }
 0x8de   : > { %v3637_v48 = vpack.c.bf16 %v2749_v47, %v2748_v43 }
 0x8e0   : > { %3616 = vmatpush3.bf16.msra.mxu1 %v3615_v49  ;;  %v2750_v49 = vld [vmem:[%s4075_s3 + $0x20] sm:$0xff] }
 0x8e1   : > { %3618 = vmatprep.subr.bf16.mxu1 %v3617_v52  ;;  %v3640_v51 = vpack.c.bf16 %v2751_v50, %v2750_v49  ;;  %v2752_v52 = vld [vmem:[%s4075_s3 + $0x30] sm:$0xff]  ;;  %s4633_s3 = scalar_lea.vmem %s4587_s7, %s4030_s13  ;;  %v3887_v49 = vmov 1.0  }
 0x8e2   : > { %v3643_v54 = vpack.c.bf16 %v2753_v53, %v2752_v52 }
 0x8e4   : > { %3620 = vmatpush3.bf16.msra.mxu1 %v3619_v56 }
 0x8e5   : > { %3622 = vmatprep.subr.bf16.mxu1 %v3621_v60 }
 0x8e8   : > { %3624 = vmatpush3.bf16.msra.mxu1 %v3623_v61  ;;  %v3200_v61 = vld [vmem:[%s4633_s3] ss:$0 sm:$0xff]  ;;  %s3793_s3 = scalar_lea.vmem %s3792_s27, 256 }
 0x8e9   : > { %3626 = vmatprep.subr.bf16.mxu1 %v3625_v2  ;;  %v2862_v2 = vld [vmem:[%s4081_s19 + $0x8] sm:$0xff] }
 0x8ec   : > { %3628 = vmatpush3.bf16.msra.mxu1 %v3627_v8  ;;  %v2865_v8 = vld [vmem:[%s4081_s19 + $0x20] sm:$0xff] }
 0x8ed   : > { %3630 = vmatprep.subr.bf16.mxu1 %v3629_v12  ;;  %v3652_v10 = vpack.c.bf16 %v2866_v9, %v2865_v8  ;;  %v2868_v12 = vld [vmem:[%s4081_s19 + $0x38] sm:$0xff] }
 0x8f0   : > { %3632 = vmatpush3.bf16.msra.mxu1 %v3631_v13  ;;  %v3655_v13 = vpack.c.bf16 %v2868_v12, %v2867_v11 }
 0x8f1   : > { %3645 = vmatprep.subr.bf16.mxu1 %v3886_v20 }
 0x965   : > { %v1656_v5 = vpop.f32.mrb[6].mxu1 }
 0x966   : > { %1660 = vst.msk [vmem:[#allocation2 + $0x8] sm:$0xff] %vm609_vm1, %v1656_v5  ;;  %v3368_v23 = vpop.f32.mrb[7].mxu1 }
 0x969   : > { %v1824_v46 = vpop.f32.mrb[8].mxu1 }
 0x96a   : > { %1829 = vrot.lane.b32.xlu1 %v1824_v46, %s3885_s14  ;;  %v3378_v36 = vpop.f32.mrb[9].mxu1 }
 0x99a   : > { %v1990_v1 = vpop.f32.mrb[10].mxu1 }
 0x99b   : > { %1994 = vst.msk [vmem:[#allocation2 + $0x10] sm:$0xff] %vm609_vm1, %v1990_v1  ;;  %v3388_v7 = vpop.f32.mrb[11].mxu1  ;;  %v2861_v1 = vld [vmem:[%s4081_s19] sm:$0xff] }
 0x99c   : > { %v3646_v3 = vpack.c.bf16 %v2862_v2, %v2861_v1  ;;  %v3649_v7 = vpack.c.bf16 %v2864_v6, %v2863_v4 }
 0x99e   : > { %v2158_v45 = vpop.f32.mrb[12].mxu1 }
 0x99f   : > { %2163 = vrot.lane.b32.xlu1 %v2158_v45, %s3885_s14  ;;  %v3398_v14 = vpop.f32.mrb[13].mxu1  ;;  %v2869_v45 = vld [vmem:[%s4081_s19 + $0x40] sm:$0xff] }
 0x9a0   : > { %v2870_v14 = vld [vmem:[%s4081_s19 + $0x48] sm:$0xff] }
 0x9a2   : > { %v2324_v15 = vpop.f32.mrb[14].mxu1 }
 0x9a3   : > { %2328 = vst.msk [vmem:[#allocation2 + $0x18] sm:$0xff] %vm609_vm1, %v2324_v15  ;;  %v3408_v16 = vpop.f32.mrb[15].mxu1  ;;  %v3658_v15 = vpack.c.bf16 %v2870_v14, %v2869_v45 }
 0x9a4   : > { %v2871_v16 = vld [vmem:[%s4081_s19 + $0x50] sm:$0xff] }
 0x9a6   : > { %v2492_v17 = vpop.f32.mrb[16].mxu1 }
 0x9a7   : > { %2497 = vrot.lane.b32.xlu0 %v2492_v17, %s3885_s14  ;;  %v3418_v18 = vpop.f32.mrb[17].mxu1  ;;  %v2872_v17 = vld [vmem:[%s4081_s19 + $0x58] sm:$0xff]  ;;  %s2970_s14 = sshll.u32 %s4087_s16, 4  ;;  %s4525_s14 = int_to_ptr.vmem [resolvable:$true] %s2970_s14 }
 0x9a8   : > { %v3661_v18 = vpack.c.bf16 %v2872_v17, %v2871_v16  ;;  %s3787_s17 = scalar_lea.vmem %s4525_s14, 128  ;;  %p3794_p5 = scmp.lt.s32.totalorder %s4525_s14, %s3792_s27 }
 0x9a9   : > { %p3788_p1 = scmp.ne.s32.totalorder %s4525_s14, %s3787_s17  ;;  %p3795_p6 = scmp.lt.s32.totalorder %s3793_s3, %s3787_s17 }
 0x9ab   : > { %p3789_p2 = pnand %p3788_p1, %p4003_p3  ;;  %p3796_p7 = por %p3795_p6, %p3794_p5 }
 0x9ad   : > { %p3790_p4 = pneg %p3789_p2 }
 0x9af   : > { %p3797_p8 = pnand %p3796_p7, %p3790_p4 }
 0x9dc   : > { %v1830_v19 = vpop.permute.xlu1 %1829 }
 0x9dd   : > { %1832 = vst.msk [vmem:[#allocation2 + $0x8] sm:$0xff] %vm1497_vm4, %v1830_v19  ;;  %v2873_v19 = vld [vmem:[%s4081_s19 + $0x60] sm:$0xff] }
 0x9e4   : > { %v2502_v21 = vld [vmem:[#allocation2 + $0x8] sm:$0xff] }
 0x9e5   : > { %2640 = vmatprep.mubr.f32.mxu0 %v2502_v21  ;;  %v2874_v21 = vld [vmem:[%s4081_s19 + $0x68] sm:$0xff] }
 0x9e6   : > { %2641 = vmatmul.mubr.f32.vlgmr.msra.gmra.mrb[26].mxu0 %v2501_v22  ;;  %v3664_v22 = vpack.c.bf16 %v2874_v21, %v2873_v19 }
 0x9e7   : > { %3435 = vmatprep.mubr.msk.f32.mxu0 %vm3884_vm2, %v3883_v62  ;;  %3635 = vmatpush3.bf16.msra.mxu0 %v3634_v42 }
 0x9e8   : > { %3636 = vmatprep.subr.bf16.mxu0 %v3886_v20 }
 0x9eb   : > { %3638 = vmatpush3.bf16.msra.mxu0 %v3637_v48 }
 0x9ec   : > { %3639 = vmatprep.subr.bf16.mxu0 %v3886_v20 }
 0x9ef   : > { %3641 = vmatpush3.bf16.msra.mxu0 %v3640_v51 }
 0x9f0   : > { %3642 = vmatprep.subr.bf16.mxu0 %v3886_v20 }
 0x9f3   : > { %3644 = vmatpush3.bf16.msra.mxu0 %v3643_v54 }
 0xa11   : > { %v2164_v5 = vpop.permute.xlu1 %2163 }
 0xa12   : > { %2166 = vst.msk [vmem:[#allocation2 + $0x10] sm:$0xff] %vm1497_vm4, %v2164_v5  ;;  %v2875_v5 = vld [vmem:[%s4081_s19 + $0x70] sm:$0xff] }
 0xa19   : > { %v2498_v23 = vpop.permute.xlu0 %2497  ;;  %v2503_v25 = vld [vmem:[#allocation2 + $0x10] sm:$0xff] }
 0xa1a   : > { %2500 = vst.msk [vmem:[#allocation2 + $0x18] sm:$0xff] %vm1497_vm4, %v2498_v23  ;;  %v2876_v23 = vld [vmem:[%s4081_s19 + $0x78] sm:$0xff]  ;;  %s4635_s19 = sld [smem:[#allocation7_spill]] }
 0xa20   : > { %s4639_s13 = sand.u32 1, %s4635_s19  }
 0xa21   : > { %v2504_v24 = vld [vmem:[#allocation2 + $0x18] sm:$0xff] }
 0xa22   : > { %2710 = vmatprep.mubr.f32.mxu1 %v2504_v24  ;;  %v3667_v24 = vpack.c.bf16 %v2876_v23, %v2875_v5 }
 0xa23   : > { %2711 = vmatmul.mubr.f32.vlgmr.msra.gmra.mrb[18].mxu1 %v2503_v25  ;;  %v3201_v25 = vld [vmem:[%s590_s24] ss:$0 sm:$0xff]  ;;  %s4634_s24 = sld [smem:[#allocation10_spill]] }
 0xa24   : > { %3470 = vmatprep.mubr.msk.f32.mxu1 %vm3884_vm2, %v3883_v62  ;;  %3647 = vmatpush3.bf16.msra.mxu1 %v3646_v3 }
 0xa25   : > { %3648 = vmatprep.subr.bf16.mxu1 %v3886_v20 }
 0xa28   : > { %3650 = vmatpush3.bf16.msra.mxu1 %v3649_v7 }
 0xa29   : > { %3651 = vmatprep.subr.bf16.mxu1 %v3886_v20  ;;  %s3205_s22 = sshll.u32 %s4634_s24, 7 }
 0xa2a   : > { %s4523_s12 = scalar_lea.hbm %s4637_s28, %s3205_s22 }
 0xa2c   : > { %3653 = vmatpush3.bf16.msra.mxu1 %v3652_v10 }
 0xa2d   : > { %3654 = vmatprep.subr.bf16.mxu1 %v3886_v20 }
 0xa30   : > { %3656 = vmatpush3.bf16.msra.mxu1 %v3655_v13 }
 0xa31   : > { %3657 = vmatprep.subr.bf16.mxu1 %v3886_v20 }
 0xa34   : > { %3659 = vmatpush3.bf16.msra.mxu1 %v3658_v15 }
 0xa35   : > { %3660 = vmatprep.subr.bf16.mxu1 %v3886_v20 }
 0xa38   : > { %3662 = vmatpush3.bf16.msra.mxu1 %v3661_v18 }
 0xa39   : > { %3663 = vmatprep.subr.bf16.mxu1 %v3886_v20 }
 0xa3c   : > { %3665 = vmatpush3.bf16.msra.mxu1 %v3664_v22 }
 0xa3d   : > { %3666 = vmatprep.subr.bf16.mxu1 %v3886_v20 }
 0xa40   : > { %3668 = vmatpush3.bf16.msra.mxu1 %v3667_v24 }
 0xab9   : > { %v3275_v26 = vpop.f32.mrb[26].mxu0 }
 0xaba   : > { %v3276_v27 = vpop.f32.mrb[27].mxu0 }
 0xabb   : > { %v3277_v28 = vadd.f32 %v3276_v27, %v3275_v26 }
 0xabd   : > { %v2643_v31 = vadd.f32 %v3277_v28, %v3198_v29 }
 0xaf6   : > { %v3310_v30 = vpop.f32.mrb[18].mxu1 }
 0xaf7   : > { %v3311_v44 = vpop.f32.mrb[19].mxu1 }
 0xaf8   : > { %v3312_v32 = vadd.f32 %v3311_v44, %v3310_v30 }
 0xafa   : > { %v2713_v33 = vadd.f32 %v3312_v32, %v2643_v31 }
 0xafc   : > { %v4454_v46 = vadd.f32 %v3786_v34, %v2713_v33 }
 0xafe   : > { %v2719_v62 = vsel %vm609_vm1, %v4454_v46, 0.0 }
 0xaff   : > { %2720 = vadd.xlane.f32.xlu0 %v2719_v62 }
 0xb8c   : > { %v2721_v35 = vpop.xlane.xlu0 %2720 }
 0xb8d   : > { %v2722_v36 = vmul.f32 0.015625, %v2721_v35 }
 0xb8f   : > { %v2723_v37 = vsub.f32 %v4454_v46, %v2722_v36 }
 0xb91   : > { %v2724_v38 = vmul.f32 %v2723_v37, %v2723_v37 }
 0xb93   : > { %v2725_v39 = vsel %vm609_vm1, %v2724_v38, 0.0 }
 0xb94   : > { %2726 = vadd.xlane.f32.xlu1 %v2725_v39 }
 0xc21   : > { %v2727_v55 = vpop.xlane.xlu1 %2726 }
 0xc22   : > { %v2728_v56 = vmul.f32 0.015625, %v2727_v55  ;;  %v3203_v55 = vld [vmem:[%s598_s21] ss:$0 sm:$0xff]  ;;  %s2957_s21 = scalar_lea.sflag [#allocation4], %s4639_s13 }
 0xc24   : > { %v2729_v57 = vadd.f32 1e-05, %v2728_v56 }
 0xc26   : > { %3780 = vrsqrt.f32 %v2729_v57 }
 0xc30   : > { %v3781_v58 = vpop.eup %3780 }
 0xc31   : > { %v2731_v60 = vmul.f32 %v3781_v58, %v2723_v37 }
 0xc33   : > { %v2738_v63 = vmul.f32 %v3199_v59, %v2731_v60 }
 0xc35   : > { %v2745_v0 = vadd.f32 %v3200_v61, %v2738_v63 }
 0xc37   : > { %3436 = vmatmul.mubr.msk.f32.vlgmr.msra.gmra.mrb[28].mxu0 %vm609_vm1, %v2745_v0 }
 0xd0a   : > { %v2830_v26 = vpop.f32.mrb[28].mxu0 }
 0xd0b   : > { %v2831_v27 = vadd.f32 %v3201_v25, %v2830_v26  ;;  %v3437_v28 = vpop.f32.mrb[29].mxu0 }
 0xd0d   : > { %v2835_v29 = vmul.f32 0.70710677, %v2831_v27  ;;  %v2834_v52 = vmul.f32 0.5, %v2831_v27 }
 0xd0f   : > { %v2838_v30 = vand.u32 2147483647, %v2835_v29  ;;  %vm2836_vm5 = vcmp.lt.f32.partialorder %v2835_v29, 0.0 }
 0xd10   : > { %v2837_v50 = vsel %vm2836_vm5, -1.0, %v3887_v49 }
 0xd11   : > { %v2839_v44 = vmul.f32 0.3275911, %v2838_v30  ;;  %v2852_v32 = vsub.f32 0.0, %v2838_v30 }
 0xd13   : > { %v2840_v31 = vadd.f32 1.0, %v2839_v44  ;;  %v2853_v34 = vmul.f32 %v2852_v32, %v2838_v30 }
 0xd15   : > { %3782 = vrcp.f32 %v2840_v31  ;;  %v2854_v36 = vmul.f32 1.442695, %v2853_v34 }
 0xd17   : > { %3784 = vpow2.f32 %v2854_v36 }
 0xd1f   : > { %v3783_v33 = vpop.eup %3782 }
 0xd20   : > { %v2843_v62 = vmul.f32 1.0614054, %v3783_v33 }
 0xd21   : > { %v3785_v43 = vpop.eup %3784 }
 0xd22   : > { %v2844_v35 = vadd.f32 -1.4531521, %v2843_v62 }
 0xd24   : > { %v2845_v37 = vmul.f32 %v3783_v33, %v2844_v35 }
 0xd26   : > { %v2846_v38 = vadd.f32 1.4214138, %v2845_v37 }
 0xd28   : > { %v2847_v39 = vmul.f32 %v3783_v33, %v2846_v38 }
 0xd2a   : > { %v2848_v40 = vadd.f32 -0.28449672, %v2847_v39 }
 0xd2c   : > { %v2849_v41 = vmul.f32 %v3783_v33, %v2848_v40 }
 0xd2e   : > { %v2850_v42 = vadd.f32 0.2548296, %v2849_v41 }
 0xd30   : > { %v2851_v20 = vmul.f32 %v3783_v33, %v2850_v42 }
 0xd32   : > { %v2856_v47 = vmul.f32 %v3785_v43, %v2851_v20 }
 0xd34   : > { %v2857_v48 = vsub.f32 1.0, %v2856_v47 }
 0xd36   : > { %v2858_v51 = vmul.f32 %v2857_v48, %v2837_v50 }
 0xd38   : > { %v2859_v53 = vadd.f32 1.0, %v2858_v51 }
 0xd3a   : > { %v2860_v54 = vmul.f32 %v2859_v53, %v2834_v52 }
 0xd3c   : > { %3471 = vmatmul.mubr.f32.vlgmr.msra.gmra.mrb[20].mxu1 %v2860_v54 }
 0xe0f   : > { %v2950_v56 = vpop.f32.mrb[20].mxu1 }
 0xe10   : > { %v2951_v57 = vadd.f32 %v3203_v55, %v2950_v56  ;;  %v3472_v58 = vpop.f32.mrb[21].mxu1 }
 0xe12   : > { %v2954_v59 = vadd.f32 %v2951_v57, %v4454_v46 }
 0xe14   : > { %2955 = vst.msk [vmem:[%s4087_s16] sm:$0xff] %vm609_vm1, %v2954_v59 }
 0xe15   : > { %3800 = shalt.err (!%p3797_p8)
}
 0xe16   : > { %s3801_s16 = scalar_lea.hbm %s4523_s12, 128  ;;  %s3805_s24 = scalar_lea.hbm %s4638_s30, 256 }
 0xe17   : > { %p3802_p10 = scmp.ne.s32.totalorder %s4523_s12, %s3801_s16  ;;  %p3806_p13 = scmp.lt.u32.totalorder %s4523_s12, %s4638_s30 }
 0xe18   : > { %p3807_p0 = scmp.lt.u32.totalorder %s3805_s24, %s3801_s16  ;;  %p3809_p2 = scmp.lt.u32.totalorder %s3801_s16, %s4523_s12 }
 0xe19   : > { %p3803_p11 = pnand %p3802_p10, %p4003_p3 }
 0xe1a   : > { %p3808_p1 = por %p3807_p0, %p3806_p13 }
 0xe1b   : > { %p3804_p12 = pneg %p3803_p11 }
 0xe1c   : > { %p3810_p4 = por %p3809_p2, %p3808_p1 }
 0xe1e   : > { %p3811_p5 = pnand %p3810_p4, %p3804_p12 }
 0xe20   : > { %3814 = shalt.err (!%p3811_p5)
}
 0xe21   : > { %3670 = dma.vmem_to_hbm [thread:$0]  (%p4003_p3), %s4525_s14, 128, %s4523_s12, %s2957_s21  }
 0xe22 PF: > { %s4640_s23 = sld [smem:[#allocation13_spill]]  ;;  %s4641_s22 = sld [smem:[#allocation6_spill]] }
 0xe28   : > { %p3676_p6 = scmp.ge.s32.totalorder %s4640_s23, 2  ;;  %s2982_s15 = sand.u32 1, %s4641_s22  }
 0xe29   : > { %s2983_s28 = scalar_lea.sflag [#allocation4], %s2982_s15 }
 0xe2a   : > { %p3673_p7 = pnand %p3676_p6, %p4013_p9 }
 0xe2c   : > { %3848 = dma.done.wait (!%p3673_p7), %s2983_s28, 128  }
 0xe2d   : > { %3850 = vsyncadd (!%p3673_p7), %s2983_s28, 4294967168  ;;  %s25_s28 = sadd.s32 1, %s4640_s23   ;;  %s4643_s21 = sld [smem:[#allocation7_spill]] }
 0xe2e   : > { %p22_p8 = scmp.ge.s32.totalorder %s25_s28, 18   ;;  %s4644_s22 = sld [smem:[#allocation8_spill]] }
 0xe2f   : > { %s4645_s23 = sld [smem:[#allocation18_spill]]  ;;  %s4646_s24 = sld [smem:[#allocation11_spill]] }
 0xe30   : > { %s4647_s25 = sld [smem:[#allocation12_spill]]  ;;  %s4648_s26 = sld [smem:[#allocation14_spill]] }
 0xe31   : > { %s4649_s27 = sld [smem:[#allocation16_spill]]  ;;  %24 = sbr.rel (!%p22_p8) target bundleno = 9 (0x9), region = 140 }
 0xe38   :  { %2988 = vsyncpa [#allocation4], 1 }
 0xe39   :  { %2990 = vsyncpa [#allocation4 + $0x1], 1 }

</bundles_post_ra>
